<compile_context>
chip_gen: v5e
topology: v5e:2x2
jax: 0.10.0
libtpu: 0.0.40
codegen_flags: <defaults>
</compile_context>

<pallas_src>
import functools

import jax
import jax.numpy as jnp
from jax.experimental import pallas as pl
from jax.experimental.pallas import tpu as pltpu

NEG_INF = jnp.float32(-1e30)  # stands in for float('-inf'); identical after softmax

PER_LAYER = ("ln1_w", "ln1_b", "w_qkv", "b_qkv", "w_o", "b_o",
             "ln2_w", "ln2_b", "w_ff1", "b_ff1", "w_ff2", "b_ff2")
GLOBAL_POST = ("lnf_w", "lnf_b", "w_proj", "b_proj")


# ----------------------------------------------------------------------------
# Shared math (used inside the Pallas kernel and in the pure-JAX reference)
# ----------------------------------------------------------------------------
def _layernorm(x, w, b, eps=1e-5):
    mu = jnp.mean(x, axis=-1, keepdims=True)
    var = jnp.mean(jnp.square(x - mu), axis=-1, keepdims=True)
    return (x - mu) * jax.lax.rsqrt(var + eps) * w + b


def _gelu(x):
    # tanh-approximation GELU: lowers to the EUP (its own VLIW slot) instead of
    # a ~12-op VALU erf polynomial.
    # TODO(synk): PyTorch activation='gelu' is exact-erf GELU; the tanh form
    #             deviates by <= ~3e-4 per activation element.
    c = 0.7978845608028654  # sqrt(2/pi)
    return 0.5 * x * (1.0 + jnp.tanh(c * (x + 0.044715 * x * x * x)))


# ----------------------------------------------------------------------------
# Pallas kernel: one grid step == one transformer layer.
# ----------------------------------------------------------------------------
def _action_encoder_kernel(
        tok_ref, padf_ref, pos_ref, bias_ref, ro_ref,
        w_emb_ref, b_emb_ref,
        ln1w_ref, ln1b_ref, wqkv_ref, bqkv_ref, wo_ref, bo_ref,
        ln2w_ref, ln2b_ref, wff1_ref, bff1_ref, wff2_ref, bff2_ref,
        lnfw_ref, lnfb_ref, wproj_ref, bproj_ref,
        out_ref, x_state,
        *, batch, seq, num_heads):
    l = pl.program_id(0)
    H = x_state.shape[-1]
    dh = H // num_heads

    # --- layer 0 prologue: masked_fill -> Linear -> +position, batch fused ---
    @pl.when(l == 0)
    def _():
        emb = jnp.dot(tok_ref[...] * padf_ref[...], w_emb_ref[...],
                      preferred_element_type=jnp.float32)
        x_state[...] = emb + b_emb_ref[...] + pos_ref[...]

    x = x_state[...]                                        # (B*S, H)

    # --- self-attention block (pre-norm) ---
    h = _layernorm(x, ln1w_ref[0], ln1b_ref[0])
    qkv = jnp.dot(h, wqkv_ref[0], preferred_element_type=jnp.float32) + bqkv_ref[0]
    q = qkv[:, 0:H]            # 1/sqrt(dh) is already folded into W_q / b_q
    k = qkv[:, H:2 * H]
    v = qkv[:, 2 * H:3 * H]

    per_batch = []
    for b in range(batch):                                  # static unroll (tiny B)
        lo_b, hi_b = b * seq, (b + 1) * seq
        bias_b = bias_ref[b]                                # (S, S) causal+padding
        heads = []
        for hd in range(num_heads):                         # static unroll
            lo, hi = hd * dh, (hd + 1) * dh
            s = jnp.einsum("qd,kd->qk",
                           q[lo_b:hi_b, lo:hi], k[lo_b:hi_b, lo:hi],
                           preferred_element_type=jnp.float32) + bias_b
            s = s - jnp.max(s, axis=-1, keepdims=True)
            p = jnp.exp(s)
            p = p * pl.reciprocal(jnp.sum(p, axis=-1, keepdims=True), approx=True)
            heads.append(jnp.dot(p, v[lo_b:hi_b, lo:hi],
                                 preferred_element_type=jnp.float32))
        per_batch.append(jnp.concatenate(heads, axis=-1))   # (S, H) heads contiguous
    attn = jnp.concatenate(per_batch, axis=0)               # (B*S, H)

    # single fused output projection over all batches and heads
    x = x + jnp.dot(attn, wo_ref[0], preferred_element_type=jnp.float32) + bo_ref[0]

    # --- feed-forward block (pre-norm), batch fused ---
    h2 = _layernorm(x, ln2w_ref[0], ln2b_ref[0])
    f = _gelu(jnp.dot(h2, wff1_ref[0], preferred_element_type=jnp.float32)
              + bff1_ref[0])
    x = x + jnp.dot(f, wff2_ref[0], preferred_element_type=jnp.float32) + bff2_ref[0]

    x_state[...] = x

    # --- last layer epilogue: final LN, readout gather (one-hot), projection ---
    @pl.when(l == pl.num_programs(0) - 1)
    def _():
        xf = _layernorm(x, lnfw_ref[...], lnfb_ref[...])
        y = jnp.dot(ro_ref[...], xf, preferred_element_type=jnp.float32)   # (B, H)
        out_ref[...] = (jnp.dot(y, wproj_ref[...],
                                preferred_element_type=jnp.float32)
                        + bproj_ref[...])


# ----------------------------------------------------------------------------
# Glue: mask / readout-index preprocessing (mirrors the PyTorch forward)
# ----------------------------------------------------------------------------
def _prep_inputs(tokens):
    B, S, A = tokens.shape
    pad_mask = (tokens != -100.0).sum(-1) > 0                 # (B,S) bool
    not_mask = jnp.logical_not(pad_mask)
    ridx = jnp.argmax(not_mask.astype(jnp.float32), axis=-1)  # first padded pos
    ridx = jnp.where(ridx == 0, S - 1, ridx)                  # readout fixup
    rows = jnp.arange(B, dtype=jnp.int32) * S + ridx          # row in (B*S, H)
    ro = jax.nn.one_hot(rows, B * S, dtype=jnp.float32)       # (B, B*S)
    causal = jnp.where(jnp.triu(jnp.ones((S, S), dtype=bool), k=1), NEG_INF, 0.0)
    pad_bias = jnp.where(not_mask, NEG_INF, 0.0).astype(jnp.float32)
    bias = causal[None, :, :] + pad_bias[:, None, :]          # (B,S,S)
    padf = pad_mask.astype(jnp.float32).reshape(B * S, 1)
    tok2d = tokens.reshape(B * S, A)
    return tok2d, padf, bias, ro


def fold_qk_scale(params, num_heads):
    """One-time static weight transform: fold 1/sqrt(dh) into W_q / b_q."""
    H = params["w_emb"].shape[1]
    dh = H // num_heads
    scale = jnp.float32(1.0 / (dh ** 0.5))
    p = dict(params)
    w, b = p["w_qkv"], p["b_qkv"]
    p["w_qkv"] = jnp.concatenate([w[..., :H] * scale, w[..., H:]], axis=-1)
    p["b_qkv"] = jnp.concatenate([b[..., :H] * scale, b[..., H:]], axis=-1)
    return p


@functools.partial(jax.jit, static_argnames=("num_heads", "num_layers"))
def action_encoder_forward(tokens, params, *, num_heads, num_layers):
    """Params must already have the QK scale folded (see fold_qk_scale)."""
    B, S, A = tokens.shape
    H = params["w_emb"].shape[1]
    P = params["w_proj"].shape[1]
    assert H % num_heads == 0

    tok2d, padf, bias, ro = _prep_inputs(tokens)
    pos2d = jnp.tile(params["pos"][:S], (B, 1))               # (B*S, H)

    def full_spec(shape):
        return pl.BlockSpec(shape, lambda l, _n=len(shape): (0,) * _n)

    def layer_spec(shape):
        return pl.BlockSpec((1,) + tuple(shape[1:]),
                            lambda l, _n=len(shape): (l,) + (0,) * (_n - 1))

    args = [tok2d, padf, pos2d, bias, ro, params["w_emb"], params["b_emb"]]
    in_specs = [full_spec(a.shape) for a in args]
    for name in PER_LAYER:                    # streamed one layer per grid step
        p = params[name]
        args.append(p)
        in_specs.append(layer_spec(p.shape))
    for name in GLOBAL_POST:
        p = params[name]
        args.append(p)
        in_specs.append(full_spec(p.shape))

    kernel = functools.partial(_action_encoder_kernel,
                               batch=B, seq=S, num_heads=num_heads)
    grid_spec = pltpu.PrefetchScalarGridSpec(
        num_scalar_prefetch=0,
        grid=(num_layers,),
        in_specs=in_specs,
        out_specs=pl.BlockSpec((B, P), lambda l: (0, 0)),
        scratch_shapes=[pltpu.VMEM((B * S, H), jnp.float32)],  # residual stream
    )
    return pl.pallas_call(
        kernel,
        out_shape=jax.ShapeDtypeStruct((B, P), jnp.float32),
        grid_spec=grid_spec,
        compiler_params=pltpu.CompilerParams(
            dimension_semantics=("arbitrary",),     # residual carried across layers
            vmem_limit_bytes=32 * 1024 * 1024),
    )(*args)


# ----------------------------------------------------------------------------
# Pure-JAX reference (mirrors the PyTorch module; explicit QK scale, unfolded)
# ----------------------------------------------------------------------------
def ref_forward(tokens, params, *, num_heads, num_layers):
    B, S, A = tokens.shape
    H = params["w_emb"].shape[1]
    dh = H // num_heads
    scale = 1.0 / (dh ** 0.5)

    pad_mask = (tokens != -100.0).sum(-1) > 0
    not_mask = jnp.logical_not(pad_mask)
    ridx = jnp.argmax(not_mask.astype(jnp.float32), axis=-1)
    ridx = jnp.where(ridx == 0, S - 1, ridx)
    causal = jnp.where(jnp.triu(jnp.ones((S, S), dtype=bool), k=1), NEG_INF, 0.0)
    pad_bias = jnp.where(not_mask, NEG_INF, 0.0).astype(jnp.float32)
    bias = causal[None, :, :] + pad_bias[:, None, :]          # (B,S,S)

    x = jnp.einsum("bsa,ah->bsh", tokens * pad_mask[..., None].astype(jnp.float32),
                   params["w_emb"]) + params["b_emb"] + params["pos"][None, :S]
    for l in range(num_layers):
        h = _layernorm(x, params["ln1_w"][l], params["ln1_b"][l])
        qkv = jnp.einsum("bsh,hk->bsk", h, params["w_qkv"][l]) + params["b_qkv"][l]
        q, k, v = qkv[..., :H], qkv[..., H:2 * H], qkv[..., 2 * H:]
        q = q.reshape(B, S, num_heads, dh)
        k = k.reshape(B, S, num_heads, dh)
        v = v.reshape(B, S, num_heads, dh)
        s = jnp.einsum("bqnd,bknd->bnqk", q, k) * scale + bias[:, None]
        p = jax.nn.softmax(s, axis=-1)
        o = jnp.einsum("bnqk,bknd->bqnd", p, v).reshape(B, S, H)
        x = x + jnp.einsum("bsh,ho->bso", o, params["w_o"][l]) + params["b_o"][l]
        h2 = _layernorm(x, params["ln2_w"][l], params["ln2_b"][l])
        f = _gelu(jnp.einsum("bsh,hf->bsf", h2, params["w_ff1"][l])
                  + params["b_ff1"][l])
        x = x + jnp.einsum("bsf,fh->bsh", f, params["w_ff2"][l]) + params["b_ff2"][l]
    x = _layernorm(x, params["lnf_w"], params["lnf_b"])
    sel = x[jnp.arange(B), ridx]                              # (B, H)
    return sel @ params["w_proj"] + params["b_proj"]


# ----------------------------------------------------------------------------
# Deterministic synthetic parameters (shapes follow the nn.Module __init__)
# ----------------------------------------------------------------------------
def make_params(key, action_dim, hidden_dim, num_layers, projection_dim,
                max_sequence_length, scale=0.05):
    A, H, L, P, S = action_dim, hidden_dim, num_layers, projection_dim, max_sequence_length
    F = 4 * H
    ks = jax.random.split(key, 19)

    def nrm(k, shape):
        return (scale * jax.random.normal(k, shape)).astype(jnp.float32)

    return dict(
        w_emb=nrm(ks[0], (A, H)), b_emb=nrm(ks[1], (1, H)),
        pos=nrm(ks[2], (S, H)),
        ln1_w=jnp.ones((L, 1, H), jnp.float32) + nrm(ks[3], (L, 1, H)),
        ln1_b=nrm(ks[4], (L, 1, H)),
        w_qkv=nrm(ks[5], (L, H, 3 * H)), b_qkv=nrm(ks[6], (L, 1, 3 * H)),
        w_o=nrm(ks[7], (L, H, H)), b_o=nrm(ks[8], (L, 1, H)),
        ln2_w=jnp.ones((L, 1, H), jnp.float32) + nrm(ks[9], (L, 1, H)),
        ln2_b=nrm(ks[10], (L, 1, H)),
        w_ff1=nrm(ks[11], (L, H, F)), b_ff1=nrm(ks[12], (L, 1, F)),
        w_ff2=nrm(ks[13], (L, F, H)), b_ff2=nrm(ks[14], (L, 1, H)),
        lnf_w=jnp.ones((1, H), jnp.float32) + nrm(ks[15], (1, H)),
        lnf_b=nrm(ks[16], (1, H)),
        w_proj=nrm(ks[17], (H, P)), b_proj=nrm(ks[18], (1, P)),
    )


if __name__ == "__main__":
    # small config: action_dim=4, hidden_dim=32, num_heads=4, num_layers=2,
    #               projection_dim=16, max_sequence_length=8, batch=2
    B, S, A, H, NH, L, P = 2, 8, 4, 32, 4, 2, 16

    key = jax.random.PRNGKey(0)
    kp, kt = jax.random.split(key)
    params = make_params(kp, A, H, L, P, S)

    tokens = jax.random.normal(kt, (B, S, A), dtype=jnp.float32)
    # pad the tail of batch 0 with -100 (the module's padding sentinel);
    # batch 1 has no padding -> readout_indexes fixup path (0 -> S-1) is exercised.
    tokens = tokens.at[0, 5:, :].set(-100.0)

    folded = fold_qk_scale(params, NH)   # one-time static weight transform
    out = action_encoder_forward(tokens, folded, num_heads=NH, num_layers=L)
    out = jax.block_until_ready(out)
    assert out.shape == (B, P), out.shape

    ref = ref_forward(tokens, params, num_heads=NH, num_layers=L)
    err = float(jnp.max(jnp.abs(out - ref)))
    assert err < 2e-3, f"Pallas vs JAX reference mismatch: max abs err = {err}"

    # TODO(synk): dropout layers are inference no-ops and are intentionally omitted.
    print("KERNEL_OK")
</pallas_src>

<mosaic_0001>
module attributes {stable_mosaic.version = 11 : i64} {
  func.func @_action_encoder_kernel(%arg0: i32, %arg1: memref<16x4xf32, #tpu.memory_space<vmem>>, %arg2: memref<16x1xf32, #tpu.memory_space<vmem>>, %arg3: memref<16x32xf32, #tpu.memory_space<vmem>>, %arg4: memref<2x8x8xf32, #tpu.memory_space<vmem>>, %arg5: memref<2x16xf32, #tpu.memory_space<vmem>>, %arg6: memref<4x32xf32, #tpu.memory_space<vmem>>, %arg7: memref<1x32xf32, #tpu.memory_space<vmem>>, %arg8: memref<1x1x32xf32, #tpu.memory_space<vmem>>, %arg9: memref<1x1x32xf32, #tpu.memory_space<vmem>>, %arg10: memref<1x32x96xf32, #tpu.memory_space<vmem>>, %arg11: memref<1x1x96xf32, #tpu.memory_space<vmem>>, %arg12: memref<1x32x32xf32, #tpu.memory_space<vmem>>, %arg13: memref<1x1x32xf32, #tpu.memory_space<vmem>>, %arg14: memref<1x1x32xf32, #tpu.memory_space<vmem>>, %arg15: memref<1x1x32xf32, #tpu.memory_space<vmem>>, %arg16: memref<1x32x128xf32, #tpu.memory_space<vmem>>, %arg17: memref<1x1x128xf32, #tpu.memory_space<vmem>>, %arg18: memref<1x128x32xf32, #tpu.memory_space<vmem>>, %arg19: memref<1x1x32xf32, #tpu.memory_space<vmem>>, %arg20: memref<1x32xf32, #tpu.memory_space<vmem>>, %arg21: memref<1x32xf32, #tpu.memory_space<vmem>>, %arg22: memref<32x16xf32, #tpu.memory_space<vmem>>, %arg23: memref<1x16xf32, #tpu.memory_space<vmem>>, %arg24: memref<2x16xf32, #tpu.memory_space<vmem>>, %arg25: memref<16x32xf32, #tpu.memory_space<vmem>>) attributes {dimension_semantics = [#tpu.dimension_semantics<arbitrary>], iteration_bounds = array<i64: 2>, scalar_prefetch = 0 : i64, scratch_operands = 1 : i64, tpu.core_type = #tpu.core_type<tc>, window_params = [{pipeline_mode = #tpu.pipeline_mode<synchronous>, transform_indices = @transform_0, window_bounds = array<i64: 16, 4>}, {pipeline_mode = #tpu.pipeline_mode<synchronous>, transform_indices = @transform_1, window_bounds = array<i64: 16, 1>}, {pipeline_mode = #tpu.pipeline_mode<synchronous>, transform_indices = @transform_2, window_bounds = array<i64: 16, 32>}, {pipeline_mode = #tpu.pipeline_mode<synchronous>, transform_indices = @transform_3, window_bounds = array<i64: 2, 8, 8>}, {pipeline_mode = #tpu.pipeline_mode<synchronous>, transform_indices = @transform_4, window_bounds = array<i64: 2, 16>}, {pipeline_mode = #tpu.pipeline_mode<synchronous>, transform_indices = @transform_5, window_bounds = array<i64: 4, 32>}, {pipeline_mode = #tpu.pipeline_mode<synchronous>, transform_indices = @transform_6, window_bounds = array<i64: 1, 32>}, {transform_indices = @transform_7, window_bounds = array<i64: 1, 1, 32>}, {transform_indices = @transform_8, window_bounds = array<i64: 1, 1, 32>}, {transform_indices = @transform_9, window_bounds = array<i64: 1, 32, 96>}, {transform_indices = @transform_10, window_bounds = array<i64: 1, 1, 96>}, {transform_indices = @transform_11, window_bounds = array<i64: 1, 32, 32>}, {transform_indices = @transform_12, window_bounds = array<i64: 1, 1, 32>}, {transform_indices = @transform_13, window_bounds = array<i64: 1, 1, 32>}, {transform_indices = @transform_14, window_bounds = array<i64: 1, 1, 32>}, {transform_indices = @transform_15, window_bounds = array<i64: 1, 32, 128>}, {transform_indices = @transform_16, window_bounds = array<i64: 1, 1, 128>}, {transform_indices = @transform_17, window_bounds = array<i64: 1, 128, 32>}, {transform_indices = @transform_18, window_bounds = array<i64: 1, 1, 32>}, {pipeline_mode = #tpu.pipeline_mode<synchronous>, transform_indices = @transform_19, window_bounds = array<i64: 1, 32>}, {pipeline_mode = #tpu.pipeline_mode<synchronous>, transform_indices = @transform_20, window_bounds = array<i64: 1, 32>}, {pipeline_mode = #tpu.pipeline_mode<synchronous>, transform_indices = @transform_21, window_bounds = array<i64: 32, 16>}, {pipeline_mode = #tpu.pipeline_mode<synchronous>, transform_indices = @transform_22, window_bounds = array<i64: 1, 16>}, {pipeline_mode = #tpu.pipeline_mode<synchronous>, transform_indices = @transform_23, window_bounds = array<i64: 2, 16>}]} {
    %c0_i32 = arith.constant 0 : i32
    %0 = arith.cmpi eq, %arg0, %c0_i32 : i32
    %1 = arith.extui %0 : i1 to i32
    %c0_i32_0 = arith.constant 0 : i32
    %2 = arith.cmpi ne, %1, %c0_i32_0 : i32
    scf.if %2 {
      %c0_95 = arith.constant 0 : index
      %c0_96 = arith.constant 0 : index
      %241 = vector.load %arg1[%c0_95, %c0_96] : memref<16x4xf32, #tpu.memory_space<vmem>>, vector<16x4xf32>
      %c0_97 = arith.constant 0 : index
      %c0_98 = arith.constant 0 : index
      %242 = vector.load %arg2[%c0_97, %c0_98] : memref<16x1xf32, #tpu.memory_space<vmem>>, vector<16x1xf32>
      %243 = vector.broadcast %242 : vector<16x1xf32> to vector<16x4xf32>
      %244 = arith.mulf %241, %243 : vector<16x4xf32>
      %c0_99 = arith.constant 0 : index
      %c0_100 = arith.constant 0 : index
      %245 = vector.load %arg6[%c0_99, %c0_100] : memref<4x32xf32, #tpu.memory_space<vmem>>, vector<4x32xf32>
      %cst_101 = arith.constant dense<0.000000e+00> : vector<16x32xf32>
      %246 = tpu.matmul %244, %245, %cst_101 {dimension_numbers = #tpu.dot_dimension_numbers<[1], [0], [0], [1], [0, 0, 1, 1], [], []>} : vector<16x4xf32>, vector<4x32xf32>, vector<16x32xf32> -> vector<16x32xf32>
      %c0_102 = arith.constant 0 : index
      %c0_103 = arith.constant 0 : index
      %247 = vector.load %arg7[%c0_102, %c0_103] : memref<1x32xf32, #tpu.memory_space<vmem>>, vector<1x32xf32>
      %248 = vector.broadcast %247 : vector<1x32xf32> to vector<16x32xf32>
      %249 = arith.addf %246, %248 : vector<16x32xf32>
      %c0_104 = arith.constant 0 : index
      %c0_105 = arith.constant 0 : index
      %250 = vector.load %arg3[%c0_104, %c0_105] : memref<16x32xf32, #tpu.memory_space<vmem>>, vector<16x32xf32>
      %251 = arith.addf %249, %250 : vector<16x32xf32>
      %c0_106 = arith.constant 0 : index
      %c0_107 = arith.constant 0 : index
      %252 = vector.load %arg25[%c0_106, %c0_107] : memref<16x32xf32, #tpu.memory_space<vmem>>, vector<16x32xf32>
      tpu.vector_store %arg25[%c0_106, %c0_107], %251 {strides = array<i32>} : memref<16x32xf32, #tpu.memory_space<vmem>>, vector<16x32xf32>,
    } else {
    }
    %c0 = arith.constant 0 : index
    %c0_1 = arith.constant 0 : index
    %3 = vector.load %arg25[%c0, %c0_1] : memref<16x32xf32, #tpu.memory_space<vmem>>, vector<16x32xf32>
    %c0_2 = arith.constant 0 : index
    %c0_3 = arith.constant 0 : index
    %c0_4 = arith.constant 0 : index
    %4 = vector.load %arg8[%c0_2, %c0_3, %c0_4] : memref<1x1x32xf32, #tpu.memory_space<vmem>>, vector<1x1x32xf32>
    %5 = vector.shape_cast %4 : vector<1x1x32xf32> to vector<1x32xf32>
    %c0_5 = arith.constant 0 : index
    %c0_6 = arith.constant 0 : index
    %c0_7 = arith.constant 0 : index
    %6 = vector.load %arg9[%c0_5, %c0_6, %c0_7] : memref<1x1x32xf32, #tpu.memory_space<vmem>>, vector<1x1x32xf32>
    %7 = vector.shape_cast %6 : vector<1x1x32xf32> to vector<1x32xf32>
    %cst = arith.constant dense<0.000000e+00> : vector<16xf32>
    %8 = vector.multi_reduction <add>, %3, %cst [1] : vector<16x32xf32> to vector<16xf32>
    %9 = vector.shape_cast %8 : vector<16xf32> to vector<16x1xf32>
    %cst_8 = arith.constant 3.200000e+01 : f32
    %10 = vector.broadcast %cst_8 : f32 to vector<16x1xf32>
    %11 = arith.divf %9, %10 : vector<16x1xf32>
    %12 = vector.broadcast %11 : vector<16x1xf32> to vector<16x32xf32>
    %13 = arith.subf %3, %12 : vector<16x32xf32>
    %14 = arith.mulf %13, %13 : vector<16x32xf32>
    %cst_9 = arith.constant dense<0.000000e+00> : vector<16xf32>
    %15 = vector.multi_reduction <add>, %14, %cst_9 [1] : vector<16x32xf32> to vector<16xf32>
    %16 = vector.shape_cast %15 : vector<16xf32> to vector<16x1xf32>
    %cst_10 = arith.constant 3.200000e+01 : f32
    %17 = vector.broadcast %cst_10 : f32 to vector<16x1xf32>
    %18 = arith.divf %16, %17 : vector<16x1xf32>
    %19 = vector.broadcast %11 : vector<16x1xf32> to vector<16x32xf32>
    %20 = arith.subf %3, %19 : vector<16x32xf32>
    %cst_11 = arith.constant 9.99999974E-6 : f32
    %21 = vector.broadcast %cst_11 : f32 to vector<16x1xf32>
    %22 = arith.addf %18, %21 : vector<16x1xf32>
    %23 = math.rsqrt %22 : vector<16x1xf32>
    %24 = vector.broadcast %23 : vector<16x1xf32> to vector<16x32xf32>
    %25 = arith.mulf %20, %24 : vector<16x32xf32>
    %26 = vector.broadcast %5 : vector<1x32xf32> to vector<16x32xf32>
    %27 = arith.mulf %25, %26 : vector<16x32xf32>
    %28 = vector.broadcast %7 : vector<1x32xf32> to vector<16x32xf32>
    %29 = arith.addf %27, %28 : vector<16x32xf32>
    %c0_12 = arith.constant 0 : index
    %c0_13 = arith.constant 0 : index
    %c0_14 = arith.constant 0 : index
    %30 = vector.load %arg10[%c0_12, %c0_13, %c0_14] : memref<1x32x96xf32, #tpu.memory_space<vmem>>, vector<1x32x96xf32>
    %31 = vector.shape_cast %30 : vector<1x32x96xf32> to vector<32x96xf32>
    %cst_15 = arith.constant dense<0.000000e+00> : vector<16x96xf32>
    %32 = tpu.matmul %29, %31, %cst_15 {dimension_numbers = #tpu.dot_dimension_numbers<[1], [0], [0], [1], [0, 0, 1, 1], [], []>} : vector<16x32xf32>, vector<32x96xf32>, vector<16x96xf32> -> vector<16x96xf32>
    %c0_16 = arith.constant 0 : index
    %c0_17 = arith.constant 0 : index
    %c0_18 = arith.constant 0 : index
    %33 = vector.load %arg11[%c0_16, %c0_17, %c0_18] : memref<1x1x96xf32, #tpu.memory_space<vmem>>, vector<1x1x96xf32>
    %34 = vector.shape_cast %33 : vector<1x1x96xf32> to vector<1x96xf32>
    %35 = vector.broadcast %34 : vector<1x96xf32> to vector<16x96xf32>
    %36 = arith.addf %32, %35 : vector<16x96xf32>
    %37 = vector.extract_strided_slice %36 {offsets = [0, 0], sizes = [16, 32], strides = [1, 1]} : vector<16x96xf32> to vector<16x32xf32>
    %38 = vector.extract_strided_slice %36 {offsets = [0, 32], sizes = [16, 32], strides = [1, 1]} : vector<16x96xf32> to vector<16x32xf32>
    %39 = vector.extract_strided_slice %36 {offsets = [0, 64], sizes = [16, 32], strides = [1, 1]} : vector<16x96xf32> to vector<16x32xf32>
    %c0_19 = arith.constant 0 : index
    %c0_20 = arith.constant 0 : index
    %c0_21 = arith.constant 0 : index
    %40 = vector.load %arg4[%c0_19, %c0_20, %c0_21] : memref<2x8x8xf32, #tpu.memory_space<vmem>>, vector<1x8x8xf32>
    %41 = vector.shape_cast %40 : vector<1x8x8xf32> to vector<8x8xf32>
    %42 = vector.extract_strided_slice %37 {offsets = [0, 0], sizes = [8, 8], strides = [1, 1]} : vector<16x32xf32> to vector<8x8xf32>
    %43 = vector.extract_strided_slice %38 {offsets = [0, 0], sizes = [8, 8], strides = [1, 1]} : vector<16x32xf32> to vector<8x8xf32>
    "tpu.trace_start"() <{level = 10 : i32, message = "qd,kd->qk"}> : () -> ()
    %cst_22 = arith.constant dense<0.000000e+00> : vector<8x8xf32>
    %44 = tpu.matmul %42, %43, %cst_22 {dimension_numbers = #tpu.dot_dimension_numbers<[1], [1], [0], [0], [0, 0, 1, 0], [], []>} : vector<8x8xf32>, vector<8x8xf32>, vector<8x8xf32> -> vector<8x8xf32>
    "tpu.trace_stop"() : () -> ()
    %45 = arith.addf %44, %41 : vector<8x8xf32>
    %cst_23 = arith.constant dense<0xFF800000> : vector<8xf32>
    %46 = vector.multi_reduction <maximumf>, %45, %cst_23 [1] : vector<8x8xf32> to vector<8xf32>
    %47 = vector.shape_cast %46 : vector<8xf32> to vector<8x1xf32>
    %48 = vector.broadcast %47 : vector<8x1xf32> to vector<8x8xf32>
    %49 = arith.subf %45, %48 : vector<8x8xf32>
    %50 = math.exp %49 : vector<8x8xf32>
    %cst_24 = arith.constant dense<0.000000e+00> : vector<8xf32>
    %51 = vector.multi_reduction <add>, %50, %cst_24 [1] : vector<8x8xf32> to vector<8xf32>
    %52 = vector.shape_cast %51 : vector<8xf32> to vector<8x1xf32>
    %53 = tpu.reciprocal %52 {approx = true} : vector<8x1xf32> -> vector<8x1xf32>
    %54 = vector.broadcast %53 : vector<8x1xf32> to vector<8x8xf32>
    %55 = arith.mulf %50, %54 : vector<8x8xf32>
    %56 = vector.extract_strided_slice %39 {offsets = [0, 0], sizes = [8, 8], strides = [1, 1]} : vector<16x32xf32> to vector<8x8xf32>
    %cst_25 = arith.constant dense<0.000000e+00> : vector<8x8xf32>
    %57 = tpu.matmul %55, %56, %cst_25 {dimension_numbers = #tpu.dot_dimension_numbers<[1], [0], [0], [1], [0, 0, 1, 1], [], []>} : vector<8x8xf32>, vector<8x8xf32>, vector<8x8xf32> -> vector<8x8xf32>
    %58 = vector.extract_strided_slice %37 {offsets = [0, 8], sizes = [8, 8], strides = [1, 1]} : vector<16x32xf32> to vector<8x8xf32>
    %59 = vector.extract_strided_slice %38 {offsets = [0, 8], sizes = [8, 8], strides = [1, 1]} : vector<16x32xf32> to vector<8x8xf32>
    "tpu.trace_start"() <{level = 10 : i32, message = "qd,kd->qk"}> : () -> ()
    %cst_26 = arith.constant dense<0.000000e+00> : vector<8x8xf32>
    %60 = tpu.matmul %58, %59, %cst_26 {dimension_numbers = #tpu.dot_dimension_numbers<[1], [1], [0], [0], [0, 0, 1, 0], [], []>} : vector<8x8xf32>, vector<8x8xf32>, vector<8x8xf32> -> vector<8x8xf32>
    "tpu.trace_stop"() : () -> ()
    %61 = arith.addf %60, %41 : vector<8x8xf32>
    %cst_27 = arith.constant dense<0xFF800000> : vector<8xf32>
    %62 = vector.multi_reduction <maximumf>, %61, %cst_27 [1] : vector<8x8xf32> to vector<8xf32>
    %63 = vector.shape_cast %62 : vector<8xf32> to vector<8x1xf32>
    %64 = vector.broadcast %63 : vector<8x1xf32> to vector<8x8xf32>
    %65 = arith.subf %61, %64 : vector<8x8xf32>
    %66 = math.exp %65 : vector<8x8xf32>
    %cst_28 = arith.constant dense<0.000000e+00> : vector<8xf32>
    %67 = vector.multi_reduction <add>, %66, %cst_28 [1] : vector<8x8xf32> to vector<8xf32>
    %68 = vector.shape_cast %67 : vector<8xf32> to vector<8x1xf32>
    %69 = tpu.reciprocal %68 {approx = true} : vector<8x1xf32> -> vector<8x1xf32>
    %70 = vector.broadcast %69 : vector<8x1xf32> to vector<8x8xf32>
    %71 = arith.mulf %66, %70 : vector<8x8xf32>
    %72 = vector.extract_strided_slice %39 {offsets = [0, 8], sizes = [8, 8], strides = [1, 1]} : vector<16x32xf32> to vector<8x8xf32>
    %cst_29 = arith.constant dense<0.000000e+00> : vector<8x8xf32>
    %73 = tpu.matmul %71, %72, %cst_29 {dimension_numbers = #tpu.dot_dimension_numbers<[1], [0], [0], [1], [0, 0, 1, 1], [], []>} : vector<8x8xf32>, vector<8x8xf32>, vector<8x8xf32> -> vector<8x8xf32>
    %74 = vector.extract_strided_slice %37 {offsets = [0, 16], sizes = [8, 8], strides = [1, 1]} : vector<16x32xf32> to vector<8x8xf32>
    %75 = vector.extract_strided_slice %38 {offsets = [0, 16], sizes = [8, 8], strides = [1, 1]} : vector<16x32xf32> to vector<8x8xf32>
    "tpu.trace_start"() <{level = 10 : i32, message = "qd,kd->qk"}> : () -> ()
    %cst_30 = arith.constant dense<0.000000e+00> : vector<8x8xf32>
    %76 = tpu.matmul %74, %75, %cst_30 {dimension_numbers = #tpu.dot_dimension_numbers<[1], [1], [0], [0], [0, 0, 1, 0], [], []>} : vector<8x8xf32>, vector<8x8xf32>, vector<8x8xf32> -> vector<8x8xf32>
    "tpu.trace_stop"() : () -> ()
    %77 = arith.addf %76, %41 : vector<8x8xf32>
    %cst_31 = arith.constant dense<0xFF800000> : vector<8xf32>
    %78 = vector.multi_reduction <maximumf>, %77, %cst_31 [1] : vector<8x8xf32> to vector<8xf32>
    %79 = vector.shape_cast %78 : vector<8xf32> to vector<8x1xf32>
    %80 = vector.broadcast %79 : vector<8x1xf32> to vector<8x8xf32>
    %81 = arith.subf %77, %80 : vector<8x8xf32>
    %82 = math.exp %81 : vector<8x8xf32>
    %cst_32 = arith.constant dense<0.000000e+00> : vector<8xf32>
    %83 = vector.multi_reduction <add>, %82, %cst_32 [1] : vector<8x8xf32> to vector<8xf32>
    %84 = vector.shape_cast %83 : vector<8xf32> to vector<8x1xf32>
    %85 = tpu.reciprocal %84 {approx = true} : vector<8x1xf32> -> vector<8x1xf32>
    %86 = vector.broadcast %85 : vector<8x1xf32> to vector<8x8xf32>
    %87 = arith.mulf %82, %86 : vector<8x8xf32>
    %88 = vector.extract_strided_slice %39 {offsets = [0, 16], sizes = [8, 8], strides = [1, 1]} : vector<16x32xf32> to vector<8x8xf32>
    %cst_33 = arith.constant dense<0.000000e+00> : vector<8x8xf32>
    %89 = tpu.matmul %87, %88, %cst_33 {dimension_numbers = #tpu.dot_dimension_numbers<[1], [0], [0], [1], [0, 0, 1, 1], [], []>} : vector<8x8xf32>, vector<8x8xf32>, vector<8x8xf32> -> vector<8x8xf32>
    %90 = vector.extract_strided_slice %37 {offsets = [0, 24], sizes = [8, 8], strides = [1, 1]} : vector<16x32xf32> to vector<8x8xf32>
    %91 = vector.extract_strided_slice %38 {offsets = [0, 24], sizes = [8, 8], strides = [1, 1]} : vector<16x32xf32> to vector<8x8xf32>
    "tpu.trace_start"() <{level = 10 : i32, message = "qd,kd->qk"}> : () -> ()
    %cst_34 = arith.constant dense<0.000000e+00> : vector<8x8xf32>
    %92 = tpu.matmul %90, %91, %cst_34 {dimension_numbers = #tpu.dot_dimension_numbers<[1], [1], [0], [0], [0, 0, 1, 0], [], []>} : vector<8x8xf32>, vector<8x8xf32>, vector<8x8xf32> -> vector<8x8xf32>
    "tpu.trace_stop"() : () -> ()
    %93 = arith.addf %92, %41 : vector<8x8xf32>
    %cst_35 = arith.constant dense<0xFF800000> : vector<8xf32>
    %94 = vector.multi_reduction <maximumf>, %93, %cst_35 [1] : vector<8x8xf32> to vector<8xf32>
    %95 = vector.shape_cast %94 : vector<8xf32> to vector<8x1xf32>
    %96 = vector.broadcast %95 : vector<8x1xf32> to vector<8x8xf32>
    %97 = arith.subf %93, %96 : vector<8x8xf32>
    %98 = math.exp %97 : vector<8x8xf32>
    %cst_36 = arith.constant dense<0.000000e+00> : vector<8xf32>
    %99 = vector.multi_reduction <add>, %98, %cst_36 [1] : vector<8x8xf32> to vector<8xf32>
    %100 = vector.shape_cast %99 : vector<8xf32> to vector<8x1xf32>
    %101 = tpu.reciprocal %100 {approx = true} : vector<8x1xf32> -> vector<8x1xf32>
    %102 = vector.broadcast %101 : vector<8x1xf32> to vector<8x8xf32>
    %103 = arith.mulf %98, %102 : vector<8x8xf32>
    %104 = vector.extract_strided_slice %39 {offsets = [0, 24], sizes = [8, 8], strides = [1, 1]} : vector<16x32xf32> to vector<8x8xf32>
    %cst_37 = arith.constant dense<0.000000e+00> : vector<8x8xf32>
    %105 = tpu.matmul %103, %104, %cst_37 {dimension_numbers = #tpu.dot_dimension_numbers<[1], [0], [0], [1], [0, 0, 1, 1], [], []>} : vector<8x8xf32>, vector<8x8xf32>, vector<8x8xf32> -> vector<8x8xf32>
    %106 = tpu.concatenate %57, %73, %89, %105 in 1 : vector<8x8xf32>, vector<8x8xf32>, vector<8x8xf32>, vector<8x8xf32> -> vector<8x32xf32>
    %c1 = arith.constant 1 : index
    %c0_38 = arith.constant 0 : index
    %c0_39 = arith.constant 0 : index
    %107 = vector.load %arg4[%c1, %c0_38, %c0_39] : memref<2x8x8xf32, #tpu.memory_space<vmem>>, vector<1x8x8xf32>
    %108 = vector.shape_cast %107 : vector<1x8x8xf32> to vector<8x8xf32>
    %109 = vector.extract_strided_slice %37 {offsets = [8, 0], sizes = [8, 8], strides = [1, 1]} : vector<16x32xf32> to vector<8x8xf32>
    %110 = vector.extract_strided_slice %38 {offsets = [8, 0], sizes = [8, 8], strides = [1, 1]} : vector<16x32xf32> to vector<8x8xf32>
    "tpu.trace_start"() <{level = 10 : i32, message = "qd,kd->qk"}> : () -> ()
    %cst_40 = arith.constant dense<0.000000e+00> : vector<8x8xf32>
    %111 = tpu.matmul %109, %110, %cst_40 {dimension_numbers = #tpu.dot_dimension_numbers<[1], [1], [0], [0], [0, 0, 1, 0], [], []>} : vector<8x8xf32>, vector<8x8xf32>, vector<8x8xf32> -> vector<8x8xf32>
    "tpu.trace_stop"() : () -> ()
    %112 = arith.addf %111, %108 : vector<8x8xf32>
    %cst_41 = arith.constant dense<0xFF800000> : vector<8xf32>
    %113 = vector.multi_reduction <maximumf>, %112, %cst_41 [1] : vector<8x8xf32> to vector<8xf32>
    %114 = vector.shape_cast %113 : vector<8xf32> to vector<8x1xf32>
    %115 = vector.broadcast %114 : vector<8x1xf32> to vector<8x8xf32>
    %116 = arith.subf %112, %115 : vector<8x8xf32>
    %117 = math.exp %116 : vector<8x8xf32>
    %cst_42 = arith.constant dense<0.000000e+00> : vector<8xf32>
    %118 = vector.multi_reduction <add>, %117, %cst_42 [1] : vector<8x8xf32> to vector<8xf32>
    %119 = vector.shape_cast %118 : vector<8xf32> to vector<8x1xf32>
    %120 = tpu.reciprocal %119 {approx = true} : vector<8x1xf32> -> vector<8x1xf32>
    %121 = vector.broadcast %120 : vector<8x1xf32> to vector<8x8xf32>
    %122 = arith.mulf %117, %121 : vector<8x8xf32>
    %123 = vector.extract_strided_slice %39 {offsets = [8, 0], sizes = [8, 8], strides = [1, 1]} : vector<16x32xf32> to vector<8x8xf32>
    %cst_43 = arith.constant dense<0.000000e+00> : vector<8x8xf32>
    %124 = tpu.matmul %122, %123, %cst_43 {dimension_numbers = #tpu.dot_dimension_numbers<[1], [0], [0], [1], [0, 0, 1, 1], [], []>} : vector<8x8xf32>, vector<8x8xf32>, vector<8x8xf32> -> vector<8x8xf32>
    %125 = vector.extract_strided_slice %37 {offsets = [8, 8], sizes = [8, 8], strides = [1, 1]} : vector<16x32xf32> to vector<8x8xf32>
    %126 = vector.extract_strided_slice %38 {offsets = [8, 8], sizes = [8, 8], strides = [1, 1]} : vector<16x32xf32> to vector<8x8xf32>
    "tpu.trace_start"() <{level = 10 : i32, message = "qd,kd->qk"}> : () -> ()
    %cst_44 = arith.constant dense<0.000000e+00> : vector<8x8xf32>
    %127 = tpu.matmul %125, %126, %cst_44 {dimension_numbers = #tpu.dot_dimension_numbers<[1], [1], [0], [0], [0, 0, 1, 0], [], []>} : vector<8x8xf32>, vector<8x8xf32>, vector<8x8xf32> -> vector<8x8xf32>
    "tpu.trace_stop"() : () -> ()
    %128 = arith.addf %127, %108 : vector<8x8xf32>
    %cst_45 = arith.constant dense<0xFF800000> : vector<8xf32>
    %129 = vector.multi_reduction <maximumf>, %128, %cst_45 [1] : vector<8x8xf32> to vector<8xf32>
    %130 = vector.shape_cast %129 : vector<8xf32> to vector<8x1xf32>
    %131 = vector.broadcast %130 : vector<8x1xf32> to vector<8x8xf32>
    %132 = arith.subf %128, %131 : vector<8x8xf32>
    %133 = math.exp %132 : vector<8x8xf32>
    %cst_46 = arith.constant dense<0.000000e+00> : vector<8xf32>
    %134 = vector.multi_reduction <add>, %133, %cst_46 [1] : vector<8x8xf32> to vector<8xf32>
    %135 = vector.shape_cast %134 : vector<8xf32> to vector<8x1xf32>
    %136 = tpu.reciprocal %135 {approx = true} : vector<8x1xf32> -> vector<8x1xf32>
    %137 = vector.broadcast %136 : vector<8x1xf32> to vector<8x8xf32>
    %138 = arith.mulf %133, %137 : vector<8x8xf32>
    %139 = vector.extract_strided_slice %39 {offsets = [8, 8], sizes = [8, 8], strides = [1, 1]} : vector<16x32xf32> to vector<8x8xf32>
    %cst_47 = arith.constant dense<0.000000e+00> : vector<8x8xf32>
    %140 = tpu.matmul %138, %139, %cst_47 {dimension_numbers = #tpu.dot_dimension_numbers<[1], [0], [0], [1], [0, 0, 1, 1], [], []>} : vector<8x8xf32>, vector<8x8xf32>, vector<8x8xf32> -> vector<8x8xf32>
    %141 = vector.extract_strided_slice %37 {offsets = [8, 16], sizes = [8, 8], strides = [1, 1]} : vector<16x32xf32> to vector<8x8xf32>
    %142 = vector.extract_strided_slice %38 {offsets = [8, 16], sizes = [8, 8], strides = [1, 1]} : vector<16x32xf32> to vector<8x8xf32>
    "tpu.trace_start"() <{level = 10 : i32, message = "qd,kd->qk"}> : () -> ()
    %cst_48 = arith.constant dense<0.000000e+00> : vector<8x8xf32>
    %143 = tpu.matmul %141, %142, %cst_48 {dimension_numbers = #tpu.dot_dimension_numbers<[1], [1], [0], [0], [0, 0, 1, 0], [], []>} : vector<8x8xf32>, vector<8x8xf32>, vector<8x8xf32> -> vector<8x8xf32>
    "tpu.trace_stop"() : () -> ()
    %144 = arith.addf %143, %108 : vector<8x8xf32>
    %cst_49 = arith.constant dense<0xFF800000> : vector<8xf32>
    %145 = vector.multi_reduction <maximumf>, %144, %cst_49 [1] : vector<8x8xf32> to vector<8xf32>
    %146 = vector.shape_cast %145 : vector<8xf32> to vector<8x1xf32>
    %147 = vector.broadcast %146 : vector<8x1xf32> to vector<8x8xf32>
    %148 = arith.subf %144, %147 : vector<8x8xf32>
    %149 = math.exp %148 : vector<8x8xf32>
    %cst_50 = arith.constant dense<0.000000e+00> : vector<8xf32>
    %150 = vector.multi_reduction <add>, %149, %cst_50 [1] : vector<8x8xf32> to vector<8xf32>
    %151 = vector.shape_cast %150 : vector<8xf32> to vector<8x1xf32>
    %152 = tpu.reciprocal %151 {approx = true} : vector<8x1xf32> -> vector<8x1xf32>
    %153 = vector.broadcast %152 : vector<8x1xf32> to vector<8x8xf32>
    %154 = arith.mulf %149, %153 : vector<8x8xf32>
    %155 = vector.extract_strided_slice %39 {offsets = [8, 16], sizes = [8, 8], strides = [1, 1]} : vector<16x32xf32> to vector<8x8xf32>
    %cst_51 = arith.constant dense<0.000000e+00> : vector<8x8xf32>
    %156 = tpu.matmul %154, %155, %cst_51 {dimension_numbers = #tpu.dot_dimension_numbers<[1], [0], [0], [1], [0, 0, 1, 1], [], []>} : vector<8x8xf32>, vector<8x8xf32>, vector<8x8xf32> -> vector<8x8xf32>
    %157 = vector.extract_strided_slice %37 {offsets = [8, 24], sizes = [8, 8], strides = [1, 1]} : vector<16x32xf32> to vector<8x8xf32>
    %158 = vector.extract_strided_slice %38 {offsets = [8, 24], sizes = [8, 8], strides = [1, 1]} : vector<16x32xf32> to vector<8x8xf32>
    "tpu.trace_start"() <{level = 10 : i32, message = "qd,kd->qk"}> : () -> ()
    %cst_52 = arith.constant dense<0.000000e+00> : vector<8x8xf32>
    %159 = tpu.matmul %157, %158, %cst_52 {dimension_numbers = #tpu.dot_dimension_numbers<[1], [1], [0], [0], [0, 0, 1, 0], [], []>} : vector<8x8xf32>, vector<8x8xf32>, vector<8x8xf32> -> vector<8x8xf32>
    "tpu.trace_stop"() : () -> ()
    %160 = arith.addf %159, %108 : vector<8x8xf32>
    %cst_53 = arith.constant dense<0xFF800000> : vector<8xf32>
    %161 = vector.multi_reduction <maximumf>, %160, %cst_53 [1] : vector<8x8xf32> to vector<8xf32>
    %162 = vector.shape_cast %161 : vector<8xf32> to vector<8x1xf32>
    %163 = vector.broadcast %162 : vector<8x1xf32> to vector<8x8xf32>
    %164 = arith.subf %160, %163 : vector<8x8xf32>
    %165 = math.exp %164 : vector<8x8xf32>
    %cst_54 = arith.constant dense<0.000000e+00> : vector<8xf32>
    %166 = vector.multi_reduction <add>, %165, %cst_54 [1] : vector<8x8xf32> to vector<8xf32>
    %167 = vector.shape_cast %166 : vector<8xf32> to vector<8x1xf32>
    %168 = tpu.reciprocal %167 {approx = true} : vector<8x1xf32> -> vector<8x1xf32>
    %169 = vector.broadcast %168 : vector<8x1xf32> to vector<8x8xf32>
    %170 = arith.mulf %165, %169 : vector<8x8xf32>
    %171 = vector.extract_strided_slice %39 {offsets = [8, 24], sizes = [8, 8], strides = [1, 1]} : vector<16x32xf32> to vector<8x8xf32>
    %cst_55 = arith.constant dense<0.000000e+00> : vector<8x8xf32>
    %172 = tpu.matmul %170, %171, %cst_55 {dimension_numbers = #tpu.dot_dimension_numbers<[1], [0], [0], [1], [0, 0, 1, 1], [], []>} : vector<8x8xf32>, vector<8x8xf32>, vector<8x8xf32> -> vector<8x8xf32>
    %173 = tpu.concatenate %124, %140, %156, %172 in 1 : vector<8x8xf32>, vector<8x8xf32>, vector<8x8xf32>, vector<8x8xf32> -> vector<8x32xf32>
    %174 = tpu.concatenate %106, %173 in 0 : vector<8x32xf32>, vector<8x32xf32> -> vector<16x32xf32>
    %c0_56 = arith.constant 0 : index
    %c0_57 = arith.constant 0 : index
    %c0_58 = arith.constant 0 : index
    %175 = vector.load %arg12[%c0_56, %c0_57, %c0_58] : memref<1x32x32xf32, #tpu.memory_space<vmem>>, vector<1x32x32xf32>
    %176 = vector.shape_cast %175 : vector<1x32x32xf32> to vector<32x32xf32>
    %cst_59 = arith.constant dense<0.000000e+00> : vector<16x32xf32>
    %177 = tpu.matmul %174, %176, %cst_59 {dimension_numbers = #tpu.dot_dimension_numbers<[1], [0], [0], [1], [0, 0, 1, 1], [], []>} : vector<16x32xf32>, vector<32x32xf32>, vector<16x32xf32> -> vector<16x32xf32>
    %178 = arith.addf %3, %177 : vector<16x32xf32>
    %c0_60 = arith.constant 0 : index
    %c0_61 = arith.constant 0 : index
    %c0_62 = arith.constant 0 : index
    %179 = vector.load %arg13[%c0_60, %c0_61, %c0_62] : memref<1x1x32xf32, #tpu.memory_space<vmem>>, vector<1x1x32xf32>
    %180 = vector.shape_cast %179 : vector<1x1x32xf32> to vector<1x32xf32>
    %181 = vector.broadcast %180 : vector<1x32xf32> to vector<16x32xf32>
    %182 = arith.addf %178, %181 : vector<16x32xf32>
    %c0_63 = arith.constant 0 : index
    %c0_64 = arith.constant 0 : index
    %c0_65 = arith.constant 0 : index
    %183 = vector.load %arg14[%c0_63, %c0_64, %c0_65] : memref<1x1x32xf32, #tpu.memory_space<vmem>>, vector<1x1x32xf32>
    %184 = vector.shape_cast %183 : vector<1x1x32xf32> to vector<1x32xf32>
    %c0_66 = arith.constant 0 : index
    %c0_67 = arith.constant 0 : index
    %c0_68 = arith.constant 0 : index
    %185 = vector.load %arg15[%c0_66, %c0_67, %c0_68] : memref<1x1x32xf32, #tpu.memory_space<vmem>>, vector<1x1x32xf32>
    %186 = vector.shape_cast %185 : vector<1x1x32xf32> to vector<1x32xf32>
    %cst_69 = arith.constant dense<0.000000e+00> : vector<16xf32>
    %187 = vector.multi_reduction <add>, %182, %cst_69 [1] : vector<16x32xf32> to vector<16xf32>
    %188 = vector.shape_cast %187 : vector<16xf32> to vector<16x1xf32>
    %cst_70 = arith.constant 3.200000e+01 : f32
    %189 = vector.broadcast %cst_70 : f32 to vector<16x1xf32>
    %190 = arith.divf %188, %189 : vector<16x1xf32>
    %191 = vector.broadcast %190 : vector<16x1xf32> to vector<16x32xf32>
    %192 = arith.subf %182, %191 : vector<16x32xf32>
    %193 = arith.mulf %192, %192 : vector<16x32xf32>
    %cst_71 = arith.constant dense<0.000000e+00> : vector<16xf32>
    %194 = vector.multi_reduction <add>, %193, %cst_71 [1] : vector<16x32xf32> to vector<16xf32>
    %195 = vector.shape_cast %194 : vector<16xf32> to vector<16x1xf32>
    %cst_72 = arith.constant 3.200000e+01 : f32
    %196 = vector.broadcast %cst_72 : f32 to vector<16x1xf32>
    %197 = arith.divf %195, %196 : vector<16x1xf32>
    %198 = vector.broadcast %190 : vector<16x1xf32> to vector<16x32xf32>
    %199 = arith.subf %182, %198 : vector<16x32xf32>
    %cst_73 = arith.constant 9.99999974E-6 : f32
    %200 = vector.broadcast %cst_73 : f32 to vector<16x1xf32>
    %201 = arith.addf %197, %200 : vector<16x1xf32>
    %202 = math.rsqrt %201 : vector<16x1xf32>
    %203 = vector.broadcast %202 : vector<16x1xf32> to vector<16x32xf32>
    %204 = arith.mulf %199, %203 : vector<16x32xf32>
    %205 = vector.broadcast %184 : vector<1x32xf32> to vector<16x32xf32>
    %206 = arith.mulf %204, %205 : vector<16x32xf32>
    %207 = vector.broadcast %186 : vector<1x32xf32> to vector<16x32xf32>
    %208 = arith.addf %206, %207 : vector<16x32xf32>
    %c0_74 = arith.constant 0 : index
    %c0_75 = arith.constant 0 : index
    %c0_76 = arith.constant 0 : index
    %209 = vector.load %arg16[%c0_74, %c0_75, %c0_76] : memref<1x32x128xf32, #tpu.memory_space<vmem>>, vector<1x32x128xf32>
    %210 = vector.shape_cast %209 : vector<1x32x128xf32> to vector<32x128xf32>
    %cst_77 = arith.constant dense<0.000000e+00> : vector<16x128xf32>
    %211 = tpu.matmul %208, %210, %cst_77 {dimension_numbers = #tpu.dot_dimension_numbers<[1], [0], [0], [1], [0, 0, 1, 1], [], []>} : vector<16x32xf32>, vector<32x128xf32>, vector<16x128xf32> -> vector<16x128xf32>
    %c0_78 = arith.constant 0 : index
    %c0_79 = arith.constant 0 : index
    %c0_80 = arith.constant 0 : index
    %212 = vector.load %arg17[%c0_78, %c0_79, %c0_80] : memref<1x1x128xf32, #tpu.memory_space<vmem>>, vector<1x1x128xf32>
    %213 = vector.shape_cast %212 : vector<1x1x128xf32> to vector<1x128xf32>
    %214 = vector.broadcast %213 : vector<1x128xf32> to vector<16x128xf32>
    %215 = arith.addf %211, %214 : vector<16x128xf32>
    %cst_81 = arith.constant 5.000000e-01 : f32
    %216 = vector.broadcast %cst_81 : f32 to vector<16x128xf32>
    %217 = arith.mulf %216, %215 : vector<16x128xf32>
    %cst_82 = arith.constant 4.471500e-02 : f32
    %218 = vector.broadcast %cst_82 : f32 to vector<16x128xf32>
    %219 = arith.mulf %218, %215 : vector<16x128xf32>
    %220 = arith.mulf %219, %215 : vector<16x128xf32>
    %221 = arith.mulf %220, %215 : vector<16x128xf32>
    %222 = arith.addf %215, %221 : vector<16x128xf32>
    %cst_83 = arith.constant 0.797884583 : f32
    %223 = vector.broadcast %cst_83 : f32 to vector<16x128xf32>
    %224 = arith.mulf %223, %222 : vector<16x128xf32>
    %225 = math.tanh %224 : vector<16x128xf32>
    %cst_84 = arith.constant 1.000000e+00 : f32
    %226 = vector.broadcast %cst_84 : f32 to vector<16x128xf32>
    %227 = arith.addf %226, %225 : vector<16x128xf32>
    %228 = arith.mulf %217, %227 : vector<16x128xf32>
    %c0_85 = arith.constant 0 : index
    %c0_86 = arith.constant 0 : index
    %c0_87 = arith.constant 0 : index
    %229 = vector.load %arg18[%c0_85, %c0_86, %c0_87] : memref<1x128x32xf32, #tpu.memory_space<vmem>>, vector<1x128x32xf32>
    %230 = vector.shape_cast %229 : vector<1x128x32xf32> to vector<128x32xf32>
    %cst_88 = arith.constant dense<0.000000e+00> : vector<16x32xf32>
    %231 = tpu.matmul %228, %230, %cst_88 {dimension_numbers = #tpu.dot_dimension_numbers<[1], [0], [0], [1], [0, 0, 1, 1], [], []>} : vector<16x128xf32>, vector<128x32xf32>, vector<16x32xf32> -> vector<16x32xf32>
    %232 = arith.addf %182, %231 : vector<16x32xf32>
    %c0_89 = arith.constant 0 : index
    %c0_90 = arith.constant 0 : index
    %c0_91 = arith.constant 0 : index
    %233 = vector.load %arg19[%c0_89, %c0_90, %c0_91] : memref<1x1x32xf32, #tpu.memory_space<vmem>>, vector<1x1x32xf32>
    %234 = vector.shape_cast %233 : vector<1x1x32xf32> to vector<1x32xf32>
    %235 = vector.broadcast %234 : vector<1x32xf32> to vector<16x32xf32>
    %236 = arith.addf %232, %235 : vector<16x32xf32>
    %c0_92 = arith.constant 0 : index
    %c0_93 = arith.constant 0 : index
    %237 = vector.load %arg25[%c0_92, %c0_93] : memref<16x32xf32, #tpu.memory_space<vmem>>, vector<16x32xf32>
    tpu.vector_store %arg25[%c0_92, %c0_93], %236 {strides = array<i32>} : memref<16x32xf32, #tpu.memory_space<vmem>>, vector<16x32xf32>,
    %c1_i32 = arith.constant 1 : i32
    %238 = arith.cmpi eq, %arg0, %c1_i32 : i32
    %239 = arith.extui %238 : i1 to i32
    %c0_i32_94 = arith.constant 0 : i32
    %240 = arith.cmpi ne, %239, %c0_i32_94 : i32
    scf.if %240 {
      %c0_95 = arith.constant 0 : index
      %c0_96 = arith.constant 0 : index
      %241 = vector.load %arg20[%c0_95, %c0_96] : memref<1x32xf32, #tpu.memory_space<vmem>>, vector<1x32xf32>
      %c0_97 = arith.constant 0 : index
      %c0_98 = arith.constant 0 : index
      %242 = vector.load %arg21[%c0_97, %c0_98] : memref<1x32xf32, #tpu.memory_space<vmem>>, vector<1x32xf32>
      %cst_99 = arith.constant dense<0.000000e+00> : vector<16xf32>
      %243 = vector.multi_reduction <add>, %236, %cst_99 [1] : vector<16x32xf32> to vector<16xf32>
      %244 = vector.shape_cast %243 : vector<16xf32> to vector<16x1xf32>
      %cst_100 = arith.constant 3.200000e+01 : f32
      %245 = vector.broadcast %cst_100 : f32 to vector<16x1xf32>
      %246 = arith.divf %244, %245 : vector<16x1xf32>
      %247 = vector.broadcast %246 : vector<16x1xf32> to vector<16x32xf32>
      %248 = arith.subf %236, %247 : vector<16x32xf32>
      %249 = arith.mulf %248, %248 : vector<16x32xf32>
      %cst_101 = arith.constant dense<0.000000e+00> : vector<16xf32>
      %250 = vector.multi_reduction <add>, %249, %cst_101 [1] : vector<16x32xf32> to vector<16xf32>
      %251 = vector.shape_cast %250 : vector<16xf32> to vector<16x1xf32>
      %cst_102 = arith.constant 3.200000e+01 : f32
      %252 = vector.broadcast %cst_102 : f32 to vector<16x1xf32>
      %253 = arith.divf %251, %252 : vector<16x1xf32>
      %254 = vector.broadcast %246 : vector<16x1xf32> to vector<16x32xf32>
      %255 = arith.subf %236, %254 : vector<16x32xf32>
      %cst_103 = arith.constant 9.99999974E-6 : f32
      %256 = vector.broadcast %cst_103 : f32 to vector<16x1xf32>
      %257 = arith.addf %253, %256 : vector<16x1xf32>
      %258 = math.rsqrt %257 : vector<16x1xf32>
      %259 = vector.broadcast %258 : vector<16x1xf32> to vector<16x32xf32>
      %260 = arith.mulf %255, %259 : vector<16x32xf32>
      %261 = vector.broadcast %241 : vector<1x32xf32> to vector<16x32xf32>
      %262 = arith.mulf %260, %261 : vector<16x32xf32>
      %263 = vector.broadcast %242 : vector<1x32xf32> to vector<16x32xf32>
      %264 = arith.addf %262, %263 : vector<16x32xf32>
      %c0_104 = arith.constant 0 : index
      %c0_105 = arith.constant 0 : index
      %265 = vector.load %arg5[%c0_104, %c0_105] : memref<2x16xf32, #tpu.memory_space<vmem>>, vector<2x16xf32>
      %cst_106 = arith.constant dense<0.000000e+00> : vector<2x32xf32>
      %266 = tpu.matmul %265, %264, %cst_106 {dimension_numbers = #tpu.dot_dimension_numbers<[1], [0], [0], [1], [0, 0, 1, 1], [], []>} : vector<2x16xf32>, vector<16x32xf32>, vector<2x32xf32> -> vector<2x32xf32>
      %c0_107 = arith.constant 0 : index
      %c0_108 = arith.constant 0 : index
      %267 = vector.load %arg22[%c0_107, %c0_108] : memref<32x16xf32, #tpu.memory_space<vmem>>, vector<32x16xf32>
      %cst_109 = arith.constant dense<0.000000e+00> : vector<2x16xf32>
      %268 = tpu.matmul %266, %267, %cst_109 {dimension_numbers = #tpu.dot_dimension_numbers<[1], [0], [0], [1], [0, 0, 1, 1], [], []>} : vector<2x32xf32>, vector<32x16xf32>, vector<2x16xf32> -> vector<2x16xf32>
      %c0_110 = arith.constant 0 : index
      %c0_111 = arith.constant 0 : index
      %269 = vector.load %arg23[%c0_110, %c0_111] : memref<1x16xf32, #tpu.memory_space<vmem>>, vector<1x16xf32>
      %270 = vector.broadcast %269 : vector<1x16xf32> to vector<2x16xf32>
      %271 = arith.addf %268, %270 : vector<2x16xf32>
      %c0_112 = arith.constant 0 : index
      %c0_113 = arith.constant 0 : index
      %272 = vector.load %arg24[%c0_112, %c0_113] : memref<2x16xf32, #tpu.memory_space<vmem>>, vector<2x16xf32>
      tpu.vector_store %arg24[%c0_112, %c0_113], %271 {strides = array<i32>} : memref<2x16xf32, #tpu.memory_space<vmem>>, vector<2x16xf32>,
    } else {
    }
    return
  }
  func.func @transform_0(%arg0: i32) -> (i32, i32) {
    %c0_i32 = arith.constant 0 : i32
    %c0_i32_0 = arith.constant 0 : i32
    %c0_i32_1 = arith.constant 0 : i32
    return %c0_i32, %c0_i32_0 : i32, i32
  }
  func.func @transform_1(%arg0: i32) -> (i32, i32) {
    %c0_i32 = arith.constant 0 : i32
    %c0_i32_0 = arith.constant 0 : i32
    %c0_i32_1 = arith.constant 0 : i32
    return %c0_i32, %c0_i32_0 : i32, i32
  }
  func.func @transform_2(%arg0: i32) -> (i32, i32) {
    %c0_i32 = arith.constant 0 : i32
    %c0_i32_0 = arith.constant 0 : i32
    %c0_i32_1 = arith.constant 0 : i32
    return %c0_i32, %c0_i32_0 : i32, i32
  }
  func.func @transform_3(%arg0: i32) -> (i32, i32, i32) {
    %c0_i32 = arith.constant 0 : i32
    %c0_i32_0 = arith.constant 0 : i32
    %c0_i32_1 = arith.constant 0 : i32
    %c0_i32_2 = arith.constant 0 : i32
    return %c0_i32, %c0_i32_0, %c0_i32_1 : i32, i32, i32
  }
  func.func @transform_4(%arg0: i32) -> (i32, i32) {
    %c0_i32 = arith.constant 0 : i32
    %c0_i32_0 = arith.constant 0 : i32
    %c0_i32_1 = arith.constant 0 : i32
    return %c0_i32, %c0_i32_0 : i32, i32
  }
  func.func @transform_5(%arg0: i32) -> (i32, i32) {
    %c0_i32 = arith.constant 0 : i32
    %c0_i32_0 = arith.constant 0 : i32
    %c0_i32_1 = arith.constant 0 : i32
    return %c0_i32, %c0_i32_0 : i32, i32
  }
  func.func @transform_6(%arg0: i32) -> (i32, i32) {
    %c0_i32 = arith.constant 0 : i32
    %c0_i32_0 = arith.constant 0 : i32
    %c0_i32_1 = arith.constant 0 : i32
    return %c0_i32, %c0_i32_0 : i32, i32
  }
  func.func @transform_7(%arg0: i32) -> (i32, i32, i32) {
    %c0_i32 = arith.constant 0 : i32
    %c0_i32_0 = arith.constant 0 : i32
    %c0_i32_1 = arith.constant 0 : i32
    return %arg0, %c0_i32, %c0_i32_0 : i32, i32, i32
  }
  func.func @transform_8(%arg0: i32) -> (i32, i32, i32) {
    %c0_i32 = arith.constant 0 : i32
    %c0_i32_0 = arith.constant 0 : i32
    %c0_i32_1 = arith.constant 0 : i32
    return %arg0, %c0_i32, %c0_i32_0 : i32, i32, i32
  }
  func.func @transform_9(%arg0: i32) -> (i32, i32, i32) {
    %c0_i32 = arith.constant 0 : i32
    %c0_i32_0 = arith.constant 0 : i32
    %c0_i32_1 = arith.constant 0 : i32
    return %arg0, %c0_i32, %c0_i32_0 : i32, i32, i32
  }
  func.func @transform_10(%arg0: i32) -> (i32, i32, i32) {
    %c0_i32 = arith.constant 0 : i32
    %c0_i32_0 = arith.constant 0 : i32
    %c0_i32_1 = arith.constant 0 : i32
    return %arg0, %c0_i32, %c0_i32_0 : i32, i32, i32
  }
  func.func @transform_11(%arg0: i32) -> (i32, i32, i32) {
    %c0_i32 = arith.constant 0 : i32
    %c0_i32_0 = arith.constant 0 : i32
    %c0_i32_1 = arith.constant 0 : i32
    return %arg0, %c0_i32, %c0_i32_0 : i32, i32, i32
  }
  func.func @transform_12(%arg0: i32) -> (i32, i32, i32) {
    %c0_i32 = arith.constant 0 : i32
    %c0_i32_0 = arith.constant 0 : i32
    %c0_i32_1 = arith.constant 0 : i32
    return %arg0, %c0_i32, %c0_i32_0 : i32, i32, i32
  }
  func.func @transform_13(%arg0: i32) -> (i32, i32, i32) {
    %c0_i32 = arith.constant 0 : i32
    %c0_i32_0 = arith.constant 0 : i32
    %c0_i32_1 = arith.constant 0 : i32
    return %arg0, %c0_i32, %c0_i32_0 : i32, i32, i32
  }
  func.func @transform_14(%arg0: i32) -> (i32, i32, i32) {
    %c0_i32 = arith.constant 0 : i32
    %c0_i32_0 = arith.constant 0 : i32
    %c0_i32_1 = arith.constant 0 : i32
    return %arg0, %c0_i32, %c0_i32_0 : i32, i32, i32
  }
  func.func @transform_15(%arg0: i32) -> (i32, i32, i32) {
    %c0_i32 = arith.constant 0 : i32
    %c0_i32_0 = arith.constant 0 : i32
    %c0_i32_1 = arith.constant 0 : i32
    return %arg0, %c0_i32, %c0_i32_0 : i32, i32, i32
  }
  func.func @transform_16(%arg0: i32) -> (i32, i32, i32) {
    %c0_i32 = arith.constant 0 : i32
    %c0_i32_0 = arith.constant 0 : i32
    %c0_i32_1 = arith.constant 0 : i32
    return %arg0, %c0_i32, %c0_i32_0 : i32, i32, i32
  }
  func.func @transform_17(%arg0: i32) -> (i32, i32, i32) {
    %c0_i32 = arith.constant 0 : i32
    %c0_i32_0 = arith.constant 0 : i32
    %c0_i32_1 = arith.constant 0 : i32
    return %arg0, %c0_i32, %c0_i32_0 : i32, i32, i32
  }
  func.func @transform_18(%arg0: i32) -> (i32, i32, i32) {
    %c0_i32 = arith.constant 0 : i32
    %c0_i32_0 = arith.constant 0 : i32
    %c0_i32_1 = arith.constant 0 : i32
    return %arg0, %c0_i32, %c0_i32_0 : i32, i32, i32
  }
  func.func @transform_19(%arg0: i32) -> (i32, i32) {
    %c0_i32 = arith.constant 0 : i32
    %c0_i32_0 = arith.constant 0 : i32
    %c0_i32_1 = arith.constant 0 : i32
    return %c0_i32, %c0_i32_0 : i32, i32
  }
  func.func @transform_20(%arg0: i32) -> (i32, i32) {
    %c0_i32 = arith.constant 0 : i32
    %c0_i32_0 = arith.constant 0 : i32
    %c0_i32_1 = arith.constant 0 : i32
    return %c0_i32, %c0_i32_0 : i32, i32
  }
  func.func @transform_21(%arg0: i32) -> (i32, i32) {
    %c0_i32 = arith.constant 0 : i32
    %c0_i32_0 = arith.constant 0 : i32
    %c0_i32_1 = arith.constant 0 : i32
    return %c0_i32, %c0_i32_0 : i32, i32
  }
  func.func @transform_22(%arg0: i32) -> (i32, i32) {
    %c0_i32 = arith.constant 0 : i32
    %c0_i32_0 = arith.constant 0 : i32
    %c0_i32_1 = arith.constant 0 : i32
    return %c0_i32, %c0_i32_0 : i32, i32
  }
  func.func @transform_23(%arg0: i32) -> (i32, i32) {
    %c0_i32 = arith.constant 0 : i32
    %c0_i32_0 = arith.constant 0 : i32
    %c0_i32_1 = arith.constant 0 : i32
    return %c0_i32, %c0_i32_0 : i32, i32
  }
}

</mosaic_0001>

<bundles_post_ra>
// kernel: action_encoder_forward.1
= control target key start
LH: loop header
LB: loop body
LE: loop exit
PB: predicated region body
PF: predicated region fallthrough
CT: control target
= control target key end

     0   :  { %s2792_s0 = inlined_call_operand.vmem [shape: f32[16,4], index: 0, kind: input, shape index: {}]   ;;  %s2793_s1 = inlined_call_operand.vmem [shape: f32[16,1], index: 1, kind: input, shape index: {}]   ;;  %s2794_s2 = inlined_call_operand.vmem [shape: f32[16,32], index: 2, kind: input, shape index: {}]   ;;  %s2795_s3 = inlined_call_operand.vmem [shape: f32[2,8,8], index: 3, kind: input, shape index: {}]   ;;  %s2796_s4 = inlined_call_operand.vmem [shape: f32[2,16], index: 4, kind: input, shape index: {}]   ;;  %s2797_s5 = inlined_call_operand.vmem [shape: f32[4,32], index: 5, kind: input, shape index: {}]   ;;  %s2798_s6 = inlined_call_operand.vmem [shape: f32[1,32], index: 6, kind: input, shape index: {}]   ;;  %s2799_s7 = inlined_call_operand.vmem [shape: f32[2,1,32], index: 7, kind: input, shape index: {}]   ;;  %s2800_s8 = inlined_call_operand.vmem [shape: f32[2,1,32], index: 8, kind: input, shape index: {}]   ;;  %s2801_s9 = inlined_call_operand.vmem [shape: f32[2,32,96], index: 9, kind: input, shape index: {}]   ;;  %s2802_s10 = inlined_call_operand.vmem [shape: f32[2,1,96], index: 10, kind: input, shape index: {}]   ;;  %s2803_s11 = inlined_call_operand.vmem [shape: f32[2,32,32], index: 11, kind: input, shape index: {}]   ;;  %s2804_s12 = inlined_call_operand.vmem [shape: f32[2,1,32], index: 12, kind: input, shape index: {}]   ;;  %s2805_s13 = inlined_call_operand.vmem [shape: f32[2,1,32], index: 13, kind: input, shape index: {}]   ;;  %s2806_s14 = inlined_call_operand.vmem [shape: f32[2,1,32], index: 14, kind: input, shape index: {}]   ;;  %s2807_s15 = inlined_call_operand.vmem [shape: f32[2,32,128], index: 15, kind: input, shape index: {}]   ;;  %s2808_s16 = inlined_call_operand.vmem [shape: f32[2,1,128], index: 16, kind: input, shape index: {}]   ;;  %s2809_s17 = inlined_call_operand.vmem [shape: f32[2,128,32], index: 17, kind: input, shape index: {}]   ;;  %s2810_s18 = inlined_call_operand.vmem [shape: f32[2,1,32], index: 18, kind: input, shape index: {}]   ;;  %s2811_s19 = inlined_call_operand.vmem [shape: f32[1,32], index: 19, kind: input, shape index: {}]   ;;  %s2812_s20 = inlined_call_operand.vmem [shape: f32[1,32], index: 20, kind: input, shape index: {}]   ;;  %s2813_s21 = inlined_call_operand.vmem [shape: f32[32,16], index: 21, kind: input, shape index: {}]   ;;  %s2814_s22 = inlined_call_operand.vmem [shape: f32[1,16], index: 22, kind: input, shape index: {}]   ;;  %s2815_s23 = inlined_call_operand.hbm [shape: f32[2,16], index: 23, kind: output, shape index: {}]  }
   0x1   :  { %2821 = sst [smem:[#allocation7_spill]] %s2792_s0 }
   0x2   :  { %2822 = sst [smem:[#allocation8_spill]] %s2793_s1 }
   0x3   :  { %2823 = sst [smem:[#allocation9_spill]] %s2794_s2 }
   0x4   :  { %2824 = sst [smem:[#allocation10_spill]] %s2795_s3 }
   0x5   :  { %2825 = sst [smem:[#allocation11_spill]] %s2796_s4 }
   0x6   :  { %2826 = sst [smem:[#allocation12_spill]] %s2797_s5 }
   0x7   :  { %2827 = sst [smem:[#allocation13_spill]] %s2798_s6 }
   0x8   :  { %2828 = sst [smem:[#allocation14_spill]] %s2799_s7 }
   0x9   :  { %2829 = sst [smem:[#allocation15_spill]] %s2801_s9 }
   0xa   :  { %2830 = sst [smem:[#allocation16_spill]] %s2803_s11 }
   0xb   :  { %2831 = sst [smem:[#allocation17_spill]] %s2811_s19 }
   0xc   :  { %2832 = sst [smem:[#allocation18_spill]] %s2812_s20 }
   0xd   :  { %2833 = sst [smem:[#allocation19_spill]] %s2814_s22 }
   0xe   :  { %2834 = sst [smem:[#allocation20_spill]] %s2815_s23 }
   0xf   :  { %28 = vsyncpa [#allocation4], 0  ;;  %s2396_s4 = smov 0  }
  0x10 LB: > { %2835 = sst [smem:[#allocation6_spill]] %s2257_s4  ;;  %s2402_s30 = sadd.s32 4294967295, %s2257_s4   ;;  %s2257_s4 = sphi %s2396_s4, %s34_s4  }
  0x11   : > { %p2069_p0 = scmp.ge.s32.totalorder %s2257_s4, 1  ;;  %p727_p1 = scmp.lt.s32.totalorder %s2257_s4, 3 }
  0x13   : > { %p728_p2 = pnand %p2069_p0, %p727_p1 }
  0x14   : > { %p825_p3 = scmp.lt.s32.totalorder (!%p728_p2), %s2402_s30, 1  ;;  %s2837_s9 = sld [smem:[#allocation15_spill]] (!%p728_p2) }
  0x15   : > { %731 = sbr.rel (%p728_p2) target bundleno = 3605 (0xe15), region = 112  ;;  %s2838_s11 = sld [smem:[#allocation16_spill]] (!%p728_p2) }
  0x16   : > { %p2078_p4 = scmp.ne.s32.totalorder (!%p728_p2), %s2402_s30, 0 }
  0x1a   : > { %s2408_s24 = scalar_select %p825_p3, %s2402_s30, 1 }
  0x1b   : > { %s2839_s0 = sld [smem:[#allocation8_spill]] (!%p2078_p4) }
  0x1c   : > { %s2120_s7 = sshll.u32 %s2408_s24, 5  ;;  %s849_s20 = scalar_lea.vmem %s2805_s13, %s2408_s24 }
  0x1d   : > { %s2426_s5 = scalar_lea.vmem %s2837_s9, %s2120_s7  ;;  %s2431_s22 = scalar_lea.vmem %s2838_s11, %s2120_s7 }
  0x1e   : > { %s852_s3 = scalar_lea.vmem %s2806_s14, %s2408_s24  ;;  %s2448_s9 = scalar_lea.vmem %s2807_s15, %s2120_s7 }
  0x1f   : > { %s2123_s19 = sshll.u32 %s2408_s24, 7  ;;  %872 = sbr.rel (%p2078_p4) target bundleno = 294 (0x126), region = 116 }
  0x20   : > { %s2458_s2 = scalar_lea.vmem %s2809_s17, %s2123_s19  ;;  %s2840_s26 = sld [smem:[#allocation12_spill]] (!%p2078_p4) }
  0x21   : > { %s2841_s6 = sld [smem:[#allocation7_spill]] (!%p2078_p4) }
  0x22   : > { %s2842_s19 = sld [smem:[#allocation13_spill]] (!%p2078_p4) }
  0x23   : > { %s2843_s1 = sld [smem:[#allocation9_spill]] (!%p2078_p4) }
  0x24   : > { %v875_v0 = vld [vmem:[%s2839_s0] sm:$0xff]  ;;  %v2259_v1 = vmov 0   ;;  %v876_v2 = vld [vmem:[%s2839_s0 + $0x8] sm:$0xff]  ;;  %vm901_vm0 = vcmask 1043456   ;;  %vm894_vm1 = vcmask 31744   ;;  %vm932_vm2 = vcmask 261120  }
  0x25   : > { %2156 = vset.pattern.permute.xlu0 %v2259_v1 }
  0x26   : > { %879 = vperm.xlu0 %2156, %v875_v0   ;;  %v889_v3 = vld [vmem:[%s2840_s26] sm:$0xf] }
  0x27   : > { %2079 = vmatpush.msk.msra.mxu0 %vm901_vm0, %v889_v3  ;;  %2124 = vmatpush.msk.msra.mxu1 %vm901_vm0, %v889_v3  ;;  %v873_v4 = vld [vmem:[%s2841_s6] sm:$0xff]  ;;  %v874_v7 = vld [vmem:[%s2841_s6 + $0x8] sm:$0xff] }
  0x28   : > { %v2157_v10 = vld [vmem:[%s2842_s19] ss:$0 sm:$0xff] }
  0x29   : > { %v928_v12 = vld [vmem:[%s2843_s1] sm:$0xff]  ;;  %v929_v16 = vld [vmem:[%s2843_s1 + $0x8] sm:$0xff] }
  0x2e   : > { %884 = vperm.xlu0 %2156, %v876_v2  }
  0x98   : > { %v880_v5 = vpop.permute.xlu0 %879 }
  0x99   : > { %v887_v6 = vmul.f32 %v880_v5, %v873_v4 }
  0x9b   : > { %2080 = vmatmul.msk.f32.vlgmr.msra.gmra.mxu0 %vm894_vm1, %v887_v6 }
  0xa0   : > { %v885_v8 = vpop.permute.xlu0 %884 }
  0xa1   : > { %v888_v9 = vmul.f32 %v885_v8, %v874_v7 }
  0xa3   : > { %2081 = vmatmul.msk.f32.vlgmr.msra.gmra.mxu1 %vm894_vm1, %v888_v9 }
 0x118   : > { %v922_v11 = vpop.f32.mrf.mxu0 }
 0x119   : > { %v923_v13 = vadd.f32 %v2157_v10, %v922_v11 }
 0x11b   : > { %v930_v14 = vadd.f32 %v928_v12, %v923_v13 }
 0x11d   : > { %933 = vst.msk [vmem:[#allocation2] sm:$0xff] %vm932_vm2, %v930_v14 }
 0x120   : > { %v925_v15 = vpop.f32.mrf.mxu1 }
 0x121   : > { %v926_v17 = vadd.f32 %v2157_v10, %v925_v15 }
 0x123   : > { %v931_v18 = vadd.f32 %v929_v16, %v926_v17 }
 0x125   : > { %934 = vst.msk [vmem:[#allocation2 + $0x8] sm:$0xff] %vm932_vm2, %v931_v18 }
 0x126 PF: > { %v2489_v19 = vld [vmem:[#allocation2] sm:$0xff]  ;;  %vm939_vm3 = vcmask 261120   ;;  %v2260_v21 = vmov 32.0   ;;  %v1004_v33 = vld [vmem:[%s2426_s5 + $0x18] sm:$0xff]  ;;  %v1003_v34 = vld [vmem:[%s2426_s5 + $0x10] sm:$0xff]  ;;  %s2844_s25 = sld [smem:[#allocation14_spill]]  ;;  %s2846_s26 = scalar_lea.vmem %s2800_s8, %s2408_s24 }
 0x127   : > { %v940_v20 = vsel %vm939_vm3, %v2489_v19, 0.0  ;;  %2166 = vrcp.f32 %v2260_v21  ;;  %1027 = vmatpush.msra.mxu0 %v1004_v33  ;;  %v1002_v35 = vld [vmem:[%s2426_s5 + $0x8] sm:$0xff]  ;;  %v1001_v36 = vld [vmem:[%s2426_s5] sm:$0xff]  ;;  %s2847_s5 = scalar_lea.vmem %s2802_s10, %s2408_s24  ;;  %s2261_s7 = smov 120   ;;  %vm1042_vm8 = vcmask 64512   ;;  %vm1312_vm12 = vcmask 130048  }
 0x128   : > { %941 = vadd.xlane.f32.xlu0 %v940_v20  ;;  %v2515_v49 = vld [vmem:[%s2846_s26] ss:$0 sm:$0xff]  ;;  %s2264_s19 = smov 64   ;;  %s2265_s4 = smov 80   ;;  %vm1314_vm13 = vcmask 195584  }
 0x129   : > { %1028 = vmatpush.msra.mxu0 %v1003_v34  ;;  %v2525_v52 = vld [vmem:[%s2847_s5] ss:$0 sm:$0xff]  ;;  %s2266_s26 = smov 56   ;;  %s2848_s5 = sld [smem:[#allocation10_spill]] }
 0x12a   : > { %s2267_s28 = smov 48   ;;  %s2268_s11 = smov 104  }
 0x12b   : > { %1029 = vmatpush.msra.mxu0 %v1002_v35  ;;  %s2269_s27 = smov 112   ;;  %s2270_s29 = smov 72  }
 0x12c   : > { %s2845_s23 = scalar_lea.vmem %s2844_s25, %s2408_s24  ;;  %s2262_s25 = smov 88   ;;  %v2540_v55 = vld [vmem:[#allocation2 + $0x8] sm:$0xff] }
 0x12d   : > { %v2167_v22 = vpop.eup %2166  ;;  %1030 = vmatpush.msra.mxu0 %v1001_v36  ;;  %v2508_v46 = vld [vmem:[%s2845_s23] ss:$0 sm:$0xff]  ;;  %s2263_s23 = smov 96   ;;  %v943_v56 = vsel %vm939_vm3, %v2540_v55, 0.0  ;;  %p2113_p5 = scmp.ne.s32.totalorder %s2402_s30, 1 }
 0x12e   : > { %v947_v23 = vmul.f32 32.0, %v2167_v22  ;;  %vm951_vm4 = vweird.f32 %v2167_v22 }
 0x12f   : > { %v2556_v1 = vld [vmem:[%s2848_s5] sm:$0xff] }
 0x130   : > { %v948_v24 = vsub.f32 1.0, %v947_v23 }
 0x132   : > { %v949_v25 = vmul.f32 %v2167_v22, %v948_v24 }
 0x134   : > { %v950_v26 = vadd.f32 %v2167_v22, %v949_v25 }
 0x136   : > { %v2493_v27 = vsel %vm951_vm4, %v2167_v22, %v950_v26 }
 0x19b   : > { %v942_v28 = vpop.xlane.xlu0 %941 }
 0x19c   : > { %v953_v29 = vmul.f32 %v2493_v27, %v942_v28 }
 0x19e   : > { %v955_v30 = vsub.f32 %v2489_v19, %v953_v29 }
 0x1a0   : > { %v957_v31 = vmul.f32 %v955_v30, %v955_v30 }
 0x1a2   : > { %v959_v32 = vsel %vm939_vm3, %v957_v31, 0.0 }
 0x1a3   : > { %960 = vadd.xlane.f32.xlu0 %v959_v32 }
 0x216   : > { %v961_v37 = vpop.xlane.xlu0 %960 }
 0x217   : > { %v965_v38 = vmul.f32 %v961_v37, %v2493_v27 }
 0x219   : > { %v967_v39 = vadd.f32 1e-05, %v965_v38 }
 0x21b   : > { %2168 = vrsqrt.f32 %v967_v39  ;;  %vm975_vm6 = vweird.f32 %v967_v39 }
 0x221   : > { %v2169_v40 = vpop.eup %2168 }
 0x222   : > { %v970_v41 = vmul.f32 %v2169_v40, %v967_v39  ;;  %vm976_vm5 = vweird.f32 %v2169_v40 }
 0x223   : > { %vm977_vm7 = vmor %vm975_vm6, %vm976_vm5 }
 0x224   : > { %v971_v42 = vmul.f32 %v2169_v40, %v970_v41 }
 0x226   : > { %v972_v43 = vmul.f32 0.5, %v971_v42 }
 0x228   : > { %v973_v44 = vsub.f32 1.5, %v972_v43 }
 0x22a   : > { %v974_v45 = vmul.f32 %v2169_v40, %v973_v44 }
 0x22c   : > { %v978_v47 = vsel %vm977_vm7, %v2169_v40, %v974_v45 }
 0x22d   : > { %v989_v48 = vmul.f32 %v978_v47, %v955_v30 }
 0x22f   : > { %v994_v50 = vmul.f32 %v2508_v46, %v989_v48 }
 0x231   : > { %v999_v51 = vadd.f32 %v2515_v49, %v994_v50 }
 0x233   : > { %2082 = vmatmul.msk.f32.vlgmr.msra.gmra.mxu0 %vm939_vm3, %v999_v51 }
 0x2b0   : > { %v1032_v53 = vpop.f32.mrf.mxu0 }
 0x2b1   : > { %v2528_v54 = vadd.f32 %v2525_v52, %v1032_v53 }
 0x2b3   : > { %1104 = vrot.lane.b32.xlu0 %v2528_v54, %s2261_s7  ;;  %1106 = vrot.lane.b32.xlu2 %v2528_v54, %s2262_s25 }
 0x2b4   : > { %1040 = vrot.lane.b32.xlu1 %v2528_v54, %s2263_s23 }
 0x2bb   : > { %1078 = vrot.lane.b32.xlu2 %v2528_v54, %s2264_s19 }
 0x2c3   : > { %1171 = vrot.lane.b32.xlu2 %v2528_v54, %s2265_s4 }
 0x2dd   : > { %944 = vadd.xlane.f32.xlu0 %v943_v56 }
 0x2f1   : > { %1143 = vrot.lane.b32.xlu0 %v2528_v54, %s2266_s26 }
 0x30d   : > { %v1107_v57 = vpop.permute.xlu2 %1106 }
 0x30e   : > { %2087 = vmatpush.xpose.msk.msra.mxu3 %vm1042_vm8, %v1107_v57 }
 0x315   : > { %v1079_v58 = vpop.permute.xlu2 %1078 }
 0x31d   : > { %v1172_v61 = vpop.permute.xlu2 %1171 }
 0x325   : > { %v1105_v59 = vpop.permute.xlu0 %1104 }
 0x326   : > { %v1041_v60 = vpop.permute.xlu1 %1040  ;;  %2088 = vmatmul.msk.f32.vlgmr.msra.gmra.mxu3 %vm1042_vm8, %v1105_v59 }
 0x327   : > { %2084 = vmatpush.xpose.msk.msra.mxu1 %vm1042_vm8, %v1041_v60 }
 0x32a   : > { %2085 = vmatmul.msk.f32.vlgmr.msra.gmra.mxu1 %vm1042_vm8, %v2528_v54 }
 0x32b   : > { %1099 = vmatpush.msrb.mxu1 %v1079_v58 }
 0x32d   : > { %2090 = vmatpush.xpose.msk.msra.mxu1 %vm1042_vm8, %v1172_v61 }
 0x350   : > { %v945_v62 = vpop.xlane.xlu0 %944 }
 0x351   : > { %v954_v0 = vmul.f32 %v2493_v27, %v945_v62 }
 0x353   : > { %v956_v3 = vsub.f32 %v2540_v55, %v954_v0 }
 0x355   : > { %v958_v6 = vmul.f32 %v956_v3, %v956_v3 }
 0x357   : > { %v962_v7 = vsel %vm939_vm3, %v958_v6, 0.0 }
 0x363   : > { %v1144_v63 = vpop.permute.xlu0 %1143 }
 0x364   : > { %1164 = vmatpush.msrb.mxu3 %v1144_v63 }
 0x3a7   : > { %v1064_v2 = vpop.f32.mrf.mxu1 }
 0x3a8   : > { %v1065_v4 = vadd.f32 %v1064_v2, %v2556_v1 }
 0x3a9   : > { %v1129_v29 = vpop.f32.mrf.mxu3 }
 0x3aa   : > { %v1067_v5 = vsel %vm1042_vm8, %v1065_v4, -inf  ;;  %v1130_v30 = vadd.f32 %v1129_v29, %v2556_v1 }
 0x3ab   : > { %1068 = vmax.xlane.f32.xlu1 %v1067_v5 }
 0x3ac   : > { %v1132_v31 = vsel %vm1042_vm8, %v1130_v30, -inf }
 0x3b3   : > { %963 = vadd.xlane.f32.xlu1 %v962_v7 }
 0x3cc   : > { %1208 = vrot.lane.b32.xlu1 %v2528_v54, %s2267_s28 }
 0x3d4   : > { %1234 = vrot.lane.b32.xlu1 %v2528_v54, %s2268_s11 }
 0x41e   : > { %v1069_v8 = vpop.xlane.xlu1 %1068 }
 0x41f   : > { %v1070_v9 = vsub.f32 %v1065_v4, %v1069_v8  ;;  %v2610_v4 = vld [vmem:[%s2848_s5 + $0x8] sm:$0xff] }
 0x421   : > { %v1071_v10 = vmul.f32 1.442695, %v1070_v9 }
 0x423   : > { %2170 = vpow2.f32 %v1071_v10 }
 0x426   : > { %v964_v11 = vpop.xlane.xlu1 %963 }
 0x427   : > { %v966_v12 = vmul.f32 %v964_v11, %v2493_v27 }
 0x429   : > { %v2171_v13 = vpop.eup %2170  ;;  %v968_v14 = vadd.f32 1e-05, %v966_v12 }
 0x42a   : > { %v1073_v15 = vsel %vm1042_vm8, %v2171_v13, 0.0 }
 0x42b   : > { %1074 = vadd.xlane.f32.xlu2 %v1073_v15  ;;  %2172 = vrsqrt.f32 %v968_v14  ;;  %vm985_vm9 = vweird.f32 %v968_v14 }
 0x431   : > { %v2173_v16 = vpop.eup %2172 }
 0x432   : > { %v980_v17 = vmul.f32 %v2173_v16, %v968_v14  ;;  %vm986_vm10 = vweird.f32 %v2173_v16 }
 0x433   : > { %vm987_vm11 = vmor %vm985_vm9, %vm986_vm10 }
 0x434   : > { %v981_v18 = vmul.f32 %v2173_v16, %v980_v17 }
 0x436   : > { %v982_v20 = vmul.f32 0.5, %v981_v18 }
 0x438   : > { %v983_v21 = vsub.f32 1.5, %v982_v20 }
 0x43a   : > { %v984_v22 = vmul.f32 %v2173_v16, %v983_v21 }
 0x43c   : > { %v988_v23 = vsel %vm987_vm11, %v2173_v16, %v984_v22 }
 0x43d   : > { %v990_v24 = vmul.f32 %v988_v23, %v956_v3 }
 0x43e   : > { %v1209_v25 = vpop.permute.xlu1 %1208 }
 0x43f   : > { %1229 = vmatpush.msra.mxu3 %v1209_v25  ;;  %v995_v26 = vmul.f32 %v2508_v46, %v990_v24 }
 0x441   : > { %v1000_v28 = vadd.f32 %v2515_v49, %v995_v26 }
 0x443   : > { %1169 = vrot.lane.b32.xlu2 %v2528_v54, %s2269_s27  ;;  %2083 = vmatmul.msk.f32.gmra.mxu0 %vm939_vm3, %v1000_v28 }
 0x446   : > { %v1235_v43 = vpop.permute.xlu1 %1234 }
 0x46c   : > { %1133 = vmax.xlane.f32.xlu2 %v1132_v31 }
 0x484   : > { %1236 = vrot.lane.b32.xlu2 %v2528_v54, %s2270_s29 }
 0x49e   : > { %v1075_v32 = vpop.xlane.xlu2 %1074 }
 0x49f   : > { %2174 = vrcp.f32 %v1075_v32 }
 0x4a5   : > { %v2175_v33 = vpop.eup %2174 }
 0x4a6   : > { %v1077_v34 = vmul.f32 %v2175_v33, %v2171_v13  ;;  %v1170_v35 = vpop.permute.xlu2 %1169 }
 0x4a8   : > { %2086 = vmatmul.msk.f32.vlgmr.msrb.gmra.mxu1 %vm1042_vm8, %v1077_v34 }
 0x4b0   : > { %2091 = vmatmul.msk.f32.vlgmr.msra.gmra.mxu1 %vm1042_vm8, %v1170_v35 }
 0x4c0   : > { %v1035_v36 = vpop.f32.mrf.mxu0 }
 0x4c1   : > { %v2578_v37 = vadd.f32 %v2525_v52, %v1035_v36 }
 0x4c3   : > { %1319 = vrot.lane.b32.xlu0 %v2578_v37, %s2263_s23  ;;  %1514 = vrot.lane.b32.xlu2 %v2578_v37, %s2270_s29  ;;  %s2272_s23 = smov 8   ;;  %s2852_s29 = sld [smem:[#allocation17_spill]] (!%p2113_p5) }
 0x4cb   : > { %1384 = vrot.lane.b32.xlu0 %v2578_v37, %s2262_s25  ;;  %s2850_s25 = scalar_lea.vmem %s2808_s16, %s2408_s24 }
 0x4d3   : > { %1382 = vrot.lane.b32.xlu0 %v2578_v37, %s2261_s7 }
 0x4db   : > { %1447 = vrot.lane.b32.xlu0 %v2578_v37, %s2269_s27 }
 0x4df   : > { %v1134_v38 = vpop.xlane.xlu2 %1133 }
 0x4e0   : > { %v1135_v39 = vsub.f32 %v1130_v30, %v1134_v38 }
 0x4e2   : > { %v1136_v40 = vmul.f32 1.442695, %v1135_v39 }
 0x4e4   : > { %2176 = vpow2.f32 %v1136_v40 }
 0x4e7   : > { %v1237_v41 = vpop.permute.xlu2 %1236 }
 0x4e8   : > { %2093 = vmatpush.xpose.msk.msrb.mxu1 %vm1042_vm8, %v1237_v41 }
 0x4ea   : > { %v2177_v42 = vpop.eup %2176 }
 0x4eb   : > { %2094 = vmatmul.msk.f32.vlgmr.msrb.gmra.mxu1 %vm1042_vm8, %v1235_v43  ;;  %v1138_v44 = vsel %vm1042_vm8, %v2177_v42, 0.0 }
 0x4ec   : > { %1139 = vadd.xlane.f32.xlu1 %v1138_v44  ;;  %v1595_v44 = vld [vmem:[%s2431_s22 + $0x18] sm:$0xff] }
 0x51d   : > { %v1515_v50 = vpop.permute.xlu2 %1514 }
 0x525   : > { %v2591_v45 = vpop.f32.mrf.mxu1 }
 0x52d   : > { %v1194_v46 = vpop.f32.mrf.mxu1 }
 0x52e   : > { %v1195_v47 = vadd.f32 %v1194_v46, %v2556_v1  ;;  %v1594_v46 = vld [vmem:[%s2431_s22 + $0x10] sm:$0xff] }
 0x530   : > { %v1197_v48 = vsel %vm1042_vm8, %v1195_v47, -inf }
 0x531   : > { %1198 = vmax.xlane.f32.xlu1 %v1197_v48  ;;  %v1593_v48 = vld [vmem:[%s2431_s22 + $0x8] sm:$0xff] }
 0x535   : > { %v1320_v49 = vpop.permute.xlu0 %1319 }
 0x53d   : > { %v1385_v51 = vpop.permute.xlu0 %1384 }
 0x53e   : > { %2100 = vmatpush.xpose.msk.msra.mxu2 %vm1042_vm8, %v1385_v51 }
 0x542   : > { %2106 = vmatpush.xpose.msk.msrb.mxu2 %vm1042_vm8, %v1515_v50 }
 0x545   : > { %v1383_v52 = vpop.permute.xlu0 %1382 }
 0x546   : > { %2101 = vmatmul.msk.f32.vlgmr.msra.gmra.mxu2 %vm1042_vm8, %v1383_v52 }
 0x54a   : > { %1449 = vrot.lane.b32.xlu1 %v2578_v37, %s2265_s4  ;;  %s2274_s4 = smov 24  }
 0x54d   : > { %v1448_v16 = vpop.permute.xlu0 %1447 }
 0x55f   : > { %v1140_v53 = vpop.xlane.xlu1 %1139 }
 0x560   : > { %2178 = vrcp.f32 %v1140_v53 }
 0x566   : > { %v2179_v56 = vpop.eup %2178 }
 0x567   : > { %v1142_v57 = vmul.f32 %v2179_v56, %v2177_v42 }
 0x568   : > { %v1259_v58 = vpop.f32.mrf.mxu1 }
 0x569   : > { %v1260_v59 = vadd.f32 %v1259_v58, %v2556_v1  ;;  %2089 = vmatmul.msk.f32.vlgmr.msrb.gmra.mxu3 %vm1042_vm8, %v1142_v57 }
 0x56a   : > { %2097 = vmatpush.xpose.msk.msrb.mxu3 %vm1042_vm8, %v1320_v49 }
 0x56b   : > { %v1262_v60 = vsel %vm1042_vm8, %v1260_v59, -inf }
 0x56c   : > { %1263 = vmax.xlane.f32.xlu2 %v1262_v60 }
 0x5a4   : > { %v1199_v61 = vpop.xlane.xlu1 %1198 }
 0x5a5   : > { %v1200_v62 = vsub.f32 %v1195_v47, %v1199_v61 }
 0x5a7   : > { %v1201_v63 = vmul.f32 1.442695, %v1200_v62 }
 0x5a9   : > { %2180 = vpow2.f32 %v1201_v63 }
 0x5af   : > { %v2181_v0 = vpop.eup %2180 }
 0x5b0   : > { %v1203_v2 = vsel %vm1042_vm8, %v2181_v0, 0.0 }
 0x5b1   : > { %1204 = vadd.xlane.f32.xlu1 %v1203_v2 }
 0x5bc   : > { %v1450_v11 = vpop.permute.xlu1 %1449 }
 0x5c9   : > { %v1407_v5 = vpop.f32.mrf.mxu2 }
 0x5ca   : > { %1512 = vrot.lane.b32.xlu1 %v2578_v37, %s2268_s11  ;;  %v1408_v6 = vadd.f32 %v2610_v4, %v1407_v5  ;;  %s2271_s11 = smov 40  }
 0x5cc   : > { %v1410_v8 = vsel %vm1042_vm8, %v1408_v6, -inf }
 0x5df   : > { %v1264_v3 = vpop.xlane.xlu2 %1263 }
 0x5e0   : > { %v1265_v1 = vsub.f32 %v1260_v59, %v1264_v3  ;;  %v1592_v59 = vld [vmem:[%s2431_s22] sm:$0xff]  ;;  %s2855_s22 = sld [smem:[#allocation19_spill]] (!%p2113_p5) }
 0x5e2   : > { %v1266_v7 = vmul.f32 1.442695, %v1265_v1 }
 0x5e4   : > { %2182 = vpow2.f32 %v1266_v7 }
 0x5ea   : > { %v2183_v9 = vpop.eup %2182 }
 0x5eb   : > { %v1268_v10 = vsel %vm1042_vm8, %v2183_v9, 0.0 }
 0x5ec   : > { %v1166_v12 = vpop.f32.mrf.mxu3 }
 0x5f4   : > { %1411 = vmax.xlane.f32.xlu1 %v1410_v8 }
 0x5fc   : > { %1269 = vadd.xlane.f32.xlu1 %v1268_v10 }
 0x615   : > { %1273 = vrot.lane.b32.xlu1 %v2528_v54, %s2271_s11 }
 0x61d   : > { %1486 = vrot.lane.b32.xlu1 %v2578_v37, %s2267_s28  ;;  %s2273_s28 = smov 16  }
 0x624   : > { %v1205_v13 = vpop.xlane.xlu1 %1204 }
 0x625   : > { %2184 = vrcp.f32 %v1205_v13  ;;  %1300 = vrot.lane.b32.xlu1 %v1166_v12, %s2272_s23 }
 0x62b   : > { %v2185_v14 = vpop.eup %2184 }
 0x62c   : > { %v1207_v15 = vmul.f32 %v2185_v14, %v2181_v0 }
 0x62e   : > { %2092 = vmatmul.msk.f32.vlgmr.msra.gmra.mxu3 %vm1042_vm8, %v1207_v15 }
 0x62f   : > { %2103 = vmatpush.xpose.msk.msra.mxu3 %vm1042_vm8, %v1450_v11 }
 0x636   : > { %2098 = vmatmul.msk.f32.vlgmr.msrb.gmra.mxu3 %vm1042_vm8, %v2578_v37 }
 0x637   : > { %1614 = vmatpush.msrb.mxu3 %v1595_v44  ;;  %v1691_v44 = vld [vmem:[%s2448_s9 + $0x10] sm:$0xff] }
 0x639   : > { %1615 = vmatpush.msrb.mxu3 %v1594_v46  ;;  %v1690_v46 = vld [vmem:[%s2448_s9 + $0x8] sm:$0xff] }
 0x63b   : > { %1616 = vmatpush.msrb.mxu3 %v1593_v48 }
 0x63c   : > { %v1513_v54 = vpop.permute.xlu1 %1512 }
 0x63d   : > { %2107 = vmatmul.msk.f32.vlgmr.msrb.gmra.mxu2 %vm1042_vm8, %v1513_v54  ;;  %1617 = vmatpush.msrb.mxu3 %v1592_v59 }
 0x63e   : > { %2104 = vmatmul.msk.f32.vlgmr.msra.gmra.mxu3 %vm1042_vm8, %v1448_v16 }
 0x667   : > { %v1412_v17 = vpop.xlane.xlu1 %1411 }
 0x668   : > { %v1413_v26 = vsub.f32 %v1408_v6, %v1412_v17 }
 0x66a   : > { %v1414_v29 = vmul.f32 1.442695, %v1413_v26 }
 0x66f   : > { %v1270_v18 = vpop.xlane.xlu1 %1269 }
 0x670   : > { %2186 = vrcp.f32 %v1270_v18 }
 0x671   : > { %2188 = vpow2.f32 %v1414_v29 }
 0x676   : > { %v2187_v20 = vpop.eup %2186 }
 0x677   : > { %v1272_v21 = vmul.f32 %v2187_v20, %v2183_v9  ;;  %v2631_v33 = vpop.eup %2188 }
 0x678   : > { %v1416_v34 = vsel %vm1042_vm8, %v2631_v33, 0.0 }
 0x687   : > { %v1274_v22 = vpop.permute.xlu1 %1273 }
 0x688   : > { %1294 = vmatpush.msra.mxu1 %v1274_v22 }
 0x689   : > { %2095 = vmatmul.msk.f32.vlgmr.msra.gmra.mxu1 %vm1042_vm8, %v1272_v21 }
 0x68f   : > { %v1487_v57 = vpop.permute.xlu1 %1486 }
 0x697   : > { %v1301_v61 = vpop.permute.xlu1 %1300 }
 0x698   : > { %v1311_v63 = vsel %vm1042_vm8, %v2591_v45, %v1301_v61  ;;  %v2708_v61 = vld [vmem:[%s852_s3] ss:$0 sm:$0xff]  ;;  %s2853_s3 = sld [smem:[#allocation18_spill]] (!%p2113_p5) }
 0x6b1   : > { %v1231_v23 = vpop.f32.mrf.mxu3 }
 0x6b9   : > { %v1342_v24 = vpop.f32.mrf.mxu3 }
 0x6ba   : > { %v1343_v25 = vadd.f32 %v2610_v4, %v1342_v24 }
 0x6bc   : > { %v1345_v28 = vsel %vm1042_vm8, %v1343_v25, -inf }
 0x6bd   : > { %1346 = vmax.xlane.f32.xlu0 %v1345_v28 }
 0x6c0   : > { %v1537_v30 = vpop.f32.mrf.mxu2 }
 0x6c1   : > { %v1538_v31 = vadd.f32 %v2610_v4, %v1537_v30  ;;  %v1472_v47 = vpop.f32.mrf.mxu3 }
 0x6c2   : > { %v1473_v50 = vadd.f32 %v2610_v4, %v1472_v47  ;;  %v1689_v47 = vld [vmem:[%s2448_s9] sm:$0xff] }
 0x6c3   : > { %v1540_v32 = vsel %vm1042_vm8, %v1538_v31, -inf }
 0x6c4   : > { %v1475_v52 = vsel %vm1042_vm8, %v1473_v50, -inf }
 0x6c5   : > { %1541 = vmax.xlane.f32.xlu0 %v1540_v32 }
 0x6cd   : > { %1417 = vadd.xlane.f32.xlu0 %v1416_v34 }
 0x6e1   : > { %1356 = vrot.lane.b32.xlu0 %v2578_v37, %s2264_s19 }
 0x6e9   : > { %1551 = vrot.lane.b32.xlu0 %v2578_v37, %s2271_s11  ;;  %s2854_s11 = sld [smem:[#allocation11_spill]] (!%p2113_p5) }
 0x6f1   : > { %1304 = vrot.lane.b32.xlu0 %v1231_v23, %s2273_s28 }
 0x706   : > { %v1296_v35 = vpop.f32.mrf.mxu1 }
 0x707   : > { %1308 = vrot.lane.b32.xlu1 %v1296_v35, %s2274_s4 }
 0x730   : > { %v1347_v36 = vpop.xlane.xlu0 %1346 }
 0x731   : > { %v1348_v42 = vsub.f32 %v1343_v25, %v1347_v36 }
 0x733   : > { %v1349_v49 = vmul.f32 1.442695, %v1348_v42 }
 0x738   : > { %v1542_v38 = vpop.xlane.xlu0 %1541 }
 0x739   : > { %v1543_v39 = vsub.f32 %v1538_v31, %v1542_v38 }
 0x73b   : > { %v1544_v40 = vmul.f32 1.442695, %v1543_v39 }
 0x73d   : > { %2190 = vpow2.f32 %v1544_v40 }
 0x73e   : > { %2192 = vpow2.f32 %v1349_v49 }
 0x740   : > { %v1418_v51 = vpop.xlane.xlu0 %1417 }
 0x743   : > { %v2641_v41 = vpop.eup %2190 }
 0x744   : > { %v1546_v43 = vsel %vm1042_vm8, %v2641_v41, 0.0  ;;  %v2193_v53 = vpop.eup %2192 }
 0x745   : > { %1547 = vadd.xlane.f32.xlu2 %v1546_v43  ;;  %v1351_v58 = vsel %vm1042_vm8, %v2193_v53, 0.0  ;;  %v1692_v43 = vld [vmem:[%s2448_s9 + $0x18] sm:$0xff] }
 0x74d   : > { %1476 = vmax.xlane.f32.xlu2 %v1475_v52 }
 0x753   : > { %v1357_v56 = vpop.permute.xlu0 %1356 }
 0x754   : > { %1377 = vmatpush.msrb.mxu0 %v1357_v56 }
 0x755   : > { %1352 = vadd.xlane.f32.xlu2 %v1351_v58  ;;  %v2701_v58 = vld [vmem:[%s849_s20] ss:$0 sm:$0xff] }
 0x756   : > { %1507 = vmatpush.msra.mxu0 %v1487_v57 }
 0x75b   : > { %v1552_v60 = vpop.permute.xlu0 %1551 }
 0x763   : > { %v1305_v62 = vpop.permute.xlu0 %1304 }
 0x764   : > { %v1313_v0 = vsel %vm1312_vm12, %v1311_v63, %v1305_v62 }
 0x779   : > { %v1309_v2 = vpop.permute.xlu1 %1308 }
 0x77a   : > { %v1315_v3 = vsel %vm1314_vm13, %v1313_v0, %v1309_v2  ;;  %v1759_v0 = vld [vmem:[%s2458_s2 + $0x78] sm:$0xff]  ;;  %v1758_v2 = vld [vmem:[%s2458_s2 + $0x70] sm:$0xff] }
 0x77b   : > { %2109 = vmatmul.msk.f32.vlgmr.msrb.gmra.mxu3 %vm939_vm3, %v1315_v3  ;;  %1760 = vmatpush.msra.mxu2 %v1759_v0  ;;  %v1757_v3 = vld [vmem:[%s2458_s2 + $0x68] sm:$0xff] }
 0x77d   : > { %1761 = vmatpush.msra.mxu2 %v1758_v2 }
 0x77f   : > { %1762 = vmatpush.msra.mxu2 %v1757_v3 }
 0x7b8   : > { %v1548_v1 = vpop.xlane.xlu2 %1547 }
 0x7c0   : > { %v1477_v4 = vpop.xlane.xlu2 %1476 }
 0x7c1   : > { %v1478_v5 = vsub.f32 %v1473_v50, %v1477_v4 }
 0x7c3   : > { %v1479_v6 = vmul.f32 1.442695, %v1478_v5 }
 0x7c5   : > { %2194 = vpow2.f32 %v1479_v6 }
 0x7c8   : > { %v1353_v7 = vpop.xlane.xlu2 %1352 }
 0x7c9   : > { %2196 = vrcp.f32 %v1353_v7 }
 0x7ca   : > { %2198 = vrcp.f32 %v1418_v51 }
 0x7cb   : > { %v2195_v8 = vpop.eup %2194 }
 0x7cc   : > { %v1481_v9 = vsel %vm1042_vm8, %v2195_v8, 0.0 }
 0x7cd   : > { %1482 = vadd.xlane.f32.xlu2 %v1481_v9  ;;  %v1755_v9 = vld [vmem:[%s2458_s2 + $0x58] sm:$0xff] }
 0x7cf   : > { %v2197_v10 = vpop.eup %2196 }
 0x7d0   : > { %v1355_v45 = vmul.f32 %v2197_v10, %v2193_v53  ;;  %v2199_v12 = vpop.eup %2198  ;;  %v1754_v10 = vld [vmem:[%s2458_s2 + $0x50] sm:$0xff] }
 0x7d1   : > { %v1420_v14 = vmul.f32 %v2199_v12, %v2631_v33  ;;  %v1751_v12 = vld [vmem:[%s2458_s2 + $0x38] sm:$0xff] }
 0x7d2   : > { %2099 = vmatmul.msk.f32.vlgmr.msrb.gmra.mxu0 %vm1042_vm8, %v1355_v45  ;;  %v1753_v45 = vld [vmem:[%s2458_s2 + $0x48] sm:$0xff] }
 0x7d3   : > { %1715 = vmatpush.msrb.mxu0 %v1692_v43 }
 0x7d5   : > { %1716 = vmatpush.msrb.mxu0 %v1691_v44 }
 0x7d7   : > { %1717 = vmatpush.msrb.mxu0 %v1690_v46 }
 0x7d9   : > { %1718 = vmatpush.msrb.mxu0 %v1689_v47 }
 0x7e5   : > { %1421 = vrot.lane.b32.xlu2 %v2578_v37, %s2266_s26  ;;  %s2849_s26 = scalar_lea.vmem %s2804_s12, %s2408_s24 }
 0x7e6   : > { %v2161_v24 = vld [vmem:[%s2849_s26] ss:$0 sm:$0xff] }
 0x7fe   : > { %v1619_v22 = vpop.f32.mrf.mxu3 }
 0x7ff   : > { %v1625_v23 = vadd.f32 %v1619_v22, %v2489_v19 }
 0x801   : > { %v2675_v25 = vadd.f32 %v2161_v24, %v1625_v23 }
 0x803   : > { %v1635_v26 = vsel %vm939_vm3, %v2675_v25, 0.0 }
 0x840   : > { %v1483_v11 = vpop.xlane.xlu2 %1482 }
 0x841   : > { %2200 = vrcp.f32 %v1483_v11  ;;  %v1752_v11 = vld [vmem:[%s2458_s2 + $0x40] sm:$0xff] }
 0x842   : > { %2202 = vrcp.f32 %v1548_v1  ;;  %v1756_v1 = vld [vmem:[%s2458_s2 + $0x60] sm:$0xff] }
 0x843   : > { %1763 = vmatpush.msra.mxu2 %v1756_v1 }
 0x845   : > { %1764 = vmatpush.msra.mxu2 %v1755_v9 }
 0x847   : > { %v2201_v13 = vpop.eup %2200  ;;  %1765 = vmatpush.msra.mxu2 %v1754_v10 }
 0x848   : > { %v1485_v15 = vmul.f32 %v2201_v13, %v2195_v8  ;;  %v1422_v54 = vpop.permute.xlu2 %1421  ;;  %v2203_v16 = vpop.eup %2202  ;;  %v1750_v13 = vld [vmem:[%s2458_s2 + $0x30] sm:$0xff] }
 0x849   : > { %1442 = vmatpush.msrb.mxu1 %v1422_v54  ;;  %v1550_v37 = vmul.f32 %v2203_v16, %v2641_v41  ;;  %1766 = vmatpush.msra.mxu2 %v1753_v45  ;;  %v1747_v54 = vld [vmem:[%s2458_s2 + $0x18] sm:$0xff]  ;;  %v1746_v16 = vld [vmem:[%s2458_s2 + $0x10] sm:$0xff] }
 0x84a   : > { %2102 = vmatmul.msk.f32.vlgmr.msrb.gmra.mxu1 %vm1042_vm8, %v1420_v14  ;;  %2105 = vmatmul.msk.f32.vlgmr.msra.gmra.mxu0 %vm1042_vm8, %v1485_v15  ;;  %v1749_v14 = vld [vmem:[%s2458_s2 + $0x28] sm:$0xff]  ;;  %v1748_v15 = vld [vmem:[%s2458_s2 + $0x20] sm:$0xff] }
 0x84b   : > { %1572 = vmatpush.msra.mxu1 %v1552_v60  ;;  %1767 = vmatpush.msra.mxu2 %v1752_v11 }
 0x84d   : > { %1768 = vmatpush.msra.mxu2 %v1751_v12 }
 0x84f   : > { %v1379_v17 = vpop.f32.mrf.mxu0  ;;  %1769 = vmatpush.msra.mxu2 %v1750_v13 }
 0x851   : > { %1770 = vmatpush.msra.mxu2 %v1749_v14 }
 0x852   : > { %2108 = vmatmul.msk.f32.vlgmr.msra.gmra.mxu1 %vm1042_vm8, %v1550_v37  ;;  %v1745_v37 = vld [vmem:[%s2458_s2 + $0x8] sm:$0xff] }
 0x853   : > { %1771 = vmatpush.msra.mxu2 %v1748_v15 }
 0x855   : > { %1772 = vmatpush.msra.mxu2 %v1747_v54 }
 0x857   : > { %1773 = vmatpush.msra.mxu2 %v1746_v16 }
 0x859   : > { %1774 = vmatpush.msra.mxu2 %v1745_v37 }
 0x8c7   : > { %v1444_v18 = vpop.f32.mrf.mxu1  ;;  %v1509_v20 = vpop.f32.mrf.mxu0 }
 0x8c8   : > { %1578 = vrot.lane.b32.xlu0 %v1444_v18, %s2272_s23  ;;  %1582 = vrot.lane.b32.xlu2 %v1509_v20, %s2273_s28  ;;  %v2164_v18 = vld [vmem:[%s2850_s25] ss:$0 sm:$0xff]  ;;  %s2851_s23 = scalar_lea.vmem %s2810_s18, %s2408_s24 }
 0x8cf   : > { %v1574_v21 = vpop.f32.mrf.mxu1 }
 0x8d0   : > { %1586 = vrot.lane.b32.xlu1 %v1574_v21, %s2274_s4 }
 0x8f2   : > { %1636 = vadd.xlane.f32.xlu0 %v1635_v26 }
 0x922   : > { %v1583_v30 = vpop.permute.xlu2 %1582 }
 0x93a   : > { %v1579_v28 = vpop.permute.xlu0 %1578 }
 0x93b   : > { %v1589_v29 = vsel %vm1042_vm8, %v1379_v17, %v1579_v28  ;;  %v1744_v17 = vld [vmem:[%s2458_s2] sm:$0xff] }
 0x93c   : > { %v1590_v32 = vsel %vm1312_vm12, %v1589_v29, %v1583_v30  ;;  %1775 = vmatpush.msra.mxu2 %v1744_v17 }
 0x942   : > { %v1587_v31 = vpop.permute.xlu1 %1586 }
 0x943   : > { %v1591_v19 = vsel %vm1314_vm13, %v1590_v32, %v1587_v31 }
 0x944   : > { %2110 = vmatmul.msk.f32.gmra.mxu3 %vm939_vm3, %v1591_v19 }
 0x965   : > { %v1637_v33 = vpop.xlane.xlu0 %1636 }
 0x966   : > { %v1641_v34 = vmul.f32 %v1637_v33, %v2493_v27 }
 0x968   : > { %v1643_v35 = vsub.f32 %v2675_v25, %v1641_v34 }
 0x96a   : > { %v1645_v36 = vmul.f32 %v1643_v35, %v1643_v35 }
 0x96c   : > { %v1647_v38 = vsel %vm939_vm3, %v1645_v36, 0.0 }
 0x96d   : > { %1648 = vadd.xlane.f32.xlu1 %v1647_v38 }
 0x9c7   : > { %v1622_v39 = vpop.f32.mrf.mxu3 }
 0x9c8   : > { %v1626_v40 = vadd.f32 %v1622_v39, %v2540_v55 }
 0x9ca   : > { %v2687_v41 = vadd.f32 %v2161_v24, %v1626_v40 }
 0x9cc   : > { %v1638_v42 = vsel %vm939_vm3, %v2687_v41, 0.0 }
 0x9cd   : > { %1639 = vadd.xlane.f32.xlu2 %v1638_v42 }
 0x9e0   : > { %v1649_v48 = vpop.xlane.xlu1 %1648 }
 0x9e1   : > { %v1653_v49 = vmul.f32 %v1649_v48, %v2493_v27  ;;  %v2165_v48 = vld [vmem:[%s2851_s23] ss:$0 sm:$0xff] }
 0x9e3   : > { %v1655_v55 = vadd.f32 1e-05, %v1653_v49 }
 0x9e5   : > { %2204 = vrsqrt.f32 %v1655_v55  ;;  %vm1663_vm15 = vweird.f32 %v1655_v55 }
 0x9eb   : > { %v2205_v50 = vpop.eup %2204 }
 0x9ec   : > { %v1658_v51 = vmul.f32 %v2205_v50, %v1655_v55  ;;  %vm1664_vm14 = vweird.f32 %v2205_v50 }
 0x9ed   : > { %vm1665_vm0 = vmor %vm1663_vm15, %vm1664_vm14 }
 0x9ee   : > { %v1659_v52 = vmul.f32 %v2205_v50, %v1658_v51 }
 0x9f0   : > { %v1660_v53 = vmul.f32 0.5, %v1659_v52 }
 0x9f2   : > { %v1661_v56 = vsub.f32 1.5, %v1660_v53 }
 0x9f4   : > { %v1662_v57 = vmul.f32 %v2205_v50, %v1661_v56 }
 0x9f6   : > { %v1666_v59 = vsel %vm1665_vm0, %v2205_v50, %v1662_v57 }
 0x9f7   : > { %v1677_v60 = vmul.f32 %v1666_v59, %v1643_v35 }
 0x9f9   : > { %v1682_v62 = vmul.f32 %v2701_v58, %v1677_v60 }
 0x9fb   : > { %v1687_v63 = vadd.f32 %v2708_v61, %v1682_v62 }
 0x9fd   : > { %2111 = vmatmul.msk.f32.vlgmr.msrb.gmra.mxu0 %vm939_vm3, %v1687_v63 }
 0xa40   : > { %v1640_v4 = vpop.xlane.xlu2 %1639 }
 0xa41   : > { %v1642_v5 = vmul.f32 %v1640_v4, %v2493_v27 }
 0xa43   : > { %v1644_v6 = vsub.f32 %v2687_v41, %v1642_v5 }
 0xa45   : > { %v1646_v7 = vmul.f32 %v1644_v6, %v1644_v6 }
 0xa47   : > { %v1650_v8 = vsel %vm939_vm3, %v1646_v7, 0.0 }
 0xa48   : > { %1651 = vadd.xlane.f32.xlu0 %v1650_v8 }
 0xa7a   : > { %v1720_v20 = vpop.f32.mrf.mxu0 }
 0xa7b   : > { %v1721_v21 = vadd.f32 %v2164_v18, %v1720_v20 }
 0xa7d   : > { %v1728_v22 = vmul.f32 0.044715, %v1721_v21  ;;  %v1726_v30 = vmul.f32 0.5, %v1721_v21 }
 0xa7f   : > { %v1730_v23 = vmul.f32 %v1728_v22, %v1721_v21 }
 0xa81   : > { %v1732_v24 = vmul.f32 %v1730_v23, %v1721_v21 }
 0xa83   : > { %v1734_v26 = vadd.f32 %v1732_v24, %v1721_v21 }
 0xa85   : > { %v1736_v28 = vmul.f32 0.7978846, %v1734_v26 }
 0xa87   : > { %2206 = vtanh.f32 %v1736_v28 }
 0xa8d   : > { %v2207_v29 = vpop.eup %2206 }
 0xa8e   : > { %v1740_v31 = vadd.f32 1.0, %v2207_v29 }
 0xa90   : > { %v1742_v32 = vmul.f32 %v1740_v31, %v1726_v30 }
 0xa92   : > { %1776 = vmatmul.f32.vlgmr.msra.gmra.mxu2 %v1742_v32 }
 0xabb   : > { %v1652_v19 = vpop.xlane.xlu0 %1651 }
 0xabc   : > { %v1654_v33 = vmul.f32 %v1652_v19, %v2493_v27 }
 0xabe   : > { %v1656_v34 = vadd.f32 1e-05, %v1654_v33 }
 0xac0   : > { %2208 = vrsqrt.f32 %v1656_v34  ;;  %vm1673_vm2 = vweird.f32 %v1656_v34 }
 0xac6   : > { %v2209_v35 = vpop.eup %2208 }
 0xac7   : > { %v1668_v36 = vmul.f32 %v2209_v35, %v1656_v34  ;;  %vm1674_vm1 = vweird.f32 %v2209_v35 }
 0xac8   : > { %vm1675_vm4 = vmor %vm1673_vm2, %vm1674_vm1 }
 0xac9   : > { %v1669_v38 = vmul.f32 %v2209_v35, %v1668_v36 }
 0xacb   : > { %v1670_v39 = vmul.f32 0.5, %v1669_v38 }
 0xacd   : > { %v1671_v40 = vsub.f32 1.5, %v1670_v39 }
 0xacf   : > { %v1672_v42 = vmul.f32 %v2209_v35, %v1671_v40 }
 0xad1   : > { %v1676_v43 = vsel %vm1675_vm4, %v2209_v35, %v1672_v42 }
 0xad2   : > { %v1678_v44 = vmul.f32 %v1676_v43, %v1644_v6 }
 0xad4   : > { %v1683_v46 = vmul.f32 %v2701_v58, %v1678_v44 }
 0xad6   : > { %v1688_v47 = vadd.f32 %v2708_v61, %v1683_v46 }
 0xad8   : > { %2112 = vmatmul.msk.f32.gmra.mxu0 %vm939_vm3, %v1688_v47 }
 0xb15   : > { %v1777_v49 = vpop.f32.mrf.mxu2 }
 0xb16   : > { %v1783_v55 = vadd.f32 %v1777_v49, %v2675_v25 }
 0xb18   : > { %v1789_v50 = vadd.f32 %v2165_v48, %v1783_v55 }
 0xb1a   : > { %1791 = vst.msk [vmem:[#allocation2] sm:$0xff] %vm939_vm3, %v1789_v50 }
 0xb55   : > { %v1723_v51 = vpop.f32.mrf.mxu0 }
 0xb56   : > { %v1724_v52 = vadd.f32 %v2164_v18, %v1723_v51 }
 0xb58   : > { %v1729_v53 = vmul.f32 0.044715, %v1724_v52  ;;  %v1727_v61 = vmul.f32 0.5, %v1724_v52 }
 0xb5a   : > { %v1731_v56 = vmul.f32 %v1729_v53, %v1724_v52 }
 0xb5c   : > { %v1733_v57 = vmul.f32 %v1731_v56, %v1724_v52 }
 0xb5e   : > { %v1735_v58 = vadd.f32 %v1733_v57, %v1724_v52 }
 0xb60   : > { %v1737_v59 = vmul.f32 0.7978846, %v1735_v58 }
 0xb62   : > { %2210 = vtanh.f32 %v1737_v59 }
 0xb68   : > { %v2211_v60 = vpop.eup %2210 }
 0xb69   : > { %v1741_v62 = vadd.f32 1.0, %v2211_v60 }
 0xb6b   : > { %v1743_v63 = vmul.f32 %v1741_v62, %v1727_v61 }
 0xb6d   : > { %1779 = vmatmul.f32.gmra.mxu2 %v1743_v63 }
 0xbf0   : > { %v1780_v0 = vpop.f32.mrf.mxu2 }
 0xbf1   : > { %v1784_v2 = vadd.f32 %v1780_v0, %v2687_v41  ;;  %1796 = sbr.rel (%p2113_p5) target bundleno = 3594 (0xe0a), region = 120 }
 0xbf3   : > { %v1790_v25 = vadd.f32 %v2165_v48, %v1784_v2 }
 0xbf5   : > { %1792 = vst.msk [vmem:[#allocation2 + $0x8] sm:$0xff] %vm939_vm3, %v1790_v25 }
 0xbf6   : > { %v1802_v3 = vsel %vm939_vm3, %v1790_v25, 0.0  ;;  %v1799_v1 = vsel %vm939_vm3, %v1789_v50, 0.0  ;;  %v1880_v15 = vld [vmem:[%s2813_s21 + $0x18] sm:$0xff]  ;;  %v1879_v54 = vld [vmem:[%s2813_s21 + $0x10] sm:$0xff]  ;;  %v1878_v37 = vld [vmem:[%s2813_s21 + $0x8] sm:$0xff]  ;;  %vm1908_vm11 = vcmask 123904  }
 0xbf7   : > { %1803 = vadd.xlane.f32.xlu0 %v1802_v3  ;;  %1900 = vmatpush.msra.mxu1 %v1880_v15  ;;  %v2212_v30 = vld [vmem:[%s2852_s29] ss:$0 sm:$0xff] }
 0xbf8   : > { %v2213_v19 = vld [vmem:[%s2853_s3] ss:$0 sm:$0xff] }
 0xbf9   : > { %1901 = vmatpush.msra.mxu1 %v1879_v54  ;;  %v1853_v44 = vld [vmem:[%s2854_s11] sm:$0x3] }
 0xbfa   : > { %v1877_v46 = vld [vmem:[%s2813_s21] sm:$0xff] }
 0xbfb   : > { %1902 = vmatpush.msra.mxu1 %v1878_v37  ;;  %v2214_v48 = vld [vmem:[%s2855_s22] ss:$0 sm:$0xff] }
 0xbfd   : > { %1903 = vmatpush.msra.mxu1 %v1877_v46 }
 0xbff   : > { %1800 = vadd.xlane.f32.xlu0 %v1799_v1 }
 0xc6a   : > { %v1804_v4 = vpop.xlane.xlu0 %1803 }
 0xc6b   : > { %v1806_v5 = vmul.f32 %v1804_v4, %v2493_v27 }
 0xc6d   : > { %v1808_v6 = vsub.f32 %v1790_v25, %v1806_v5 }
 0xc6f   : > { %v1810_v7 = vmul.f32 %v1808_v6, %v1808_v6 }
 0xc71   : > { %v1814_v8 = vsel %vm939_vm3, %v1810_v7, 0.0 }
 0xc72   : > { %1815 = vadd.xlane.f32.xlu1 %v1814_v8  ;;  %v1801_v41 = vpop.xlane.xlu0 %1800 }
 0xc73   : > { %v1805_v9 = vmul.f32 %v1801_v41, %v2493_v27 }
 0xc75   : > { %v1807_v10 = vsub.f32 %v1789_v50, %v1805_v9 }
 0xc77   : > { %v1809_v45 = vmul.f32 %v1807_v10, %v1807_v10 }
 0xc79   : > { %v1811_v11 = vsel %vm939_vm3, %v1809_v45, 0.0 }
 0xc7a   : > { %1812 = vadd.xlane.f32.xlu1 %v1811_v11 }
 0xce5   : > { %v1816_v12 = vpop.xlane.xlu1 %1815 }
 0xce6   : > { %v1818_v13 = vmul.f32 %v1816_v12, %v2493_v27 }
 0xce8   : > { %v1820_v14 = vadd.f32 1e-05, %v1818_v13 }
 0xcea   : > { %2215 = vrsqrt.f32 %v1820_v14  ;;  %vm1837_vm6 = vweird.f32 %v1820_v14 }
 0xced   : > { %v1813_v16 = vpop.xlane.xlu1 %1812 }
 0xcee   : > { %v1817_v17 = vmul.f32 %v1813_v16, %v2493_v27 }
 0xcf0   : > { %v2216_v18 = vpop.eup %2215  ;;  %v1819_v20 = vadd.f32 1e-05, %v1817_v17 }
 0xcf1   : > { %v1832_v21 = vmul.f32 %v2216_v18, %v1820_v14  ;;  %vm1838_vm5 = vweird.f32 %v2216_v18 }
 0xcf2   : > { %2217 = vrsqrt.f32 %v1819_v20  ;;  %vm1839_vm7 = vmor %vm1837_vm6, %vm1838_vm5  ;;  %vm1827_vm9 = vweird.f32 %v1819_v20 }
 0xcf3   : > { %v1833_v22 = vmul.f32 %v2216_v18, %v1832_v21 }
 0xcf5   : > { %v1834_v23 = vmul.f32 0.5, %v1833_v22 }
 0xcf7   : > { %v1835_v24 = vsub.f32 1.5, %v1834_v23 }
 0xcf8   : > { %v2218_v26 = vpop.eup %2217 }
 0xcf9   : > { %v1822_v28 = vmul.f32 %v2218_v26, %v1819_v20  ;;  %v1836_v29 = vmul.f32 %v2216_v18, %v1835_v24  ;;  %vm1828_vm8 = vweird.f32 %v2218_v26 }
 0xcfa   : > { %vm1829_vm10 = vmor %vm1827_vm9, %vm1828_vm8 }
 0xcfb   : > { %v1823_v27 = vmul.f32 %v2218_v26, %v1822_v28  ;;  %v1840_v31 = vsel %vm1839_vm7, %v2216_v18, %v1836_v29 }
 0xcfc   : > { %v1842_v32 = vmul.f32 %v1840_v31, %v1808_v6 }
 0xcfd   : > { %v1824_v33 = vmul.f32 0.5, %v1823_v27 }
 0xcfe   : > { %v1847_v34 = vmul.f32 %v2212_v30, %v1842_v32 }
 0xcff   : > { %v1825_v35 = vsub.f32 1.5, %v1824_v33 }
 0xd00   : > { %v1852_v36 = vadd.f32 %v2213_v19, %v1847_v34 }
 0xd01   : > { %v1826_v38 = vmul.f32 %v2218_v26, %v1825_v35 }
 0xd02   : > { %1871 = vmatpush.msra.mxu0 %v1852_v36 }
 0xd03   : > { %v1830_v39 = vsel %vm1829_vm10, %v2218_v26, %v1826_v38 }
 0xd04   : > { %v1841_v40 = vmul.f32 %v1830_v39, %v1807_v10 }
 0xd06   : > { %v1846_v42 = vmul.f32 %v2212_v30, %v1841_v40 }
 0xd08   : > { %v1851_v43 = vadd.f32 %v2213_v19, %v1846_v42 }
 0xd0a   : > { %1872 = vmatpush.msra.mxu0 %v1851_v43 }
 0xd0b   : > { %2114 = vmatmul.msk.f32.vlgmr.msra.gmra.mxu0 %vm1312_vm12, %v1853_v44 }
 0xd88   : > { %v1874_v47 = vpop.f32.mrf.mxu0 }
 0xd89   : > { %2115 = vmatmul.msk.f32.vlgmr.msra.gmra.mxu1 %vm939_vm3, %v1874_v47 }
 0xe06   : > { %v1905_v49 = vpop.f32.mrf.mxu1 }
 0xe07   : > { %v1906_v55 = vadd.f32 %v2214_v48, %v1905_v49 }
 0xe09   : > { %1909 = vst.msk [vmem:[#allocation3] sm:$0x3] %vm1908_vm11, %v1906_v55 }
 0xe0a PF: > { %p2129_p6 = scmp.eq.s32.totalorder %s2402_s30, 1  ;;  %s2275_s19 = smov [#allocation3]  }
 0xe0b   : > { %s1916_s26 = sshll.u32 %s2275_s19, 4  ;;  %s2856_s29 = sld [smem:[#allocation20_spill]]  ;;  %s1917_s26 = int_to_ptr.vmem [resolvable:$true] %s1916_s26 }
 0xe11   : > { %s1918_s7 = sshll.u32 %s2856_s29, 4  ;;  %s1919_s7 = int_to_ptr.hbm [resolvable:$true] %s1918_s7 }
 0xe12   : > { %2126 = dma.vmem_to_hbm [thread:$0]  (%p2129_p6), %s1917_s26, 32, %s1919_s7, [#allocation4]  }
 0xe13   : > { %2252 = dma.done.wait (%p2129_p6), [#allocation4], 32  }
 0xe14   : > { %2254 = vsyncadd (%p2129_p6), [#allocation4], 4294967264 }
 0xe15 PF: > { %s2857_s20 = sld [smem:[#allocation6_spill]] }
 0xe1b   : > { %s34_s4 = sadd.s32 1, %s2857_s20  }
 0xe1c   : > { %p31_p7 = scmp.ge.s32.totalorder %s34_s4, 4  }
 0xe1e   :  { %33 = sbr.rel (!%p31_p7) target bundleno = 16 (0x10), region = 181 }
 0xe23   :  { %1932 = vsyncpa [#allocation4], 1 }
 0xe24   :  { %1934 = vsyncpa [#allocation4 + $0x1], 1 }

</bundles_post_ra>
